<compile_context>
chip_gen: v5e
topology: v5e:2x2
jax: 0.10.0
libtpu: 0.0.40
codegen_flags: <defaults>
</compile_context>

<pallas_src>
import functools

import jax
import jax.numpy as jnp
from jax import lax
from jax.experimental import pallas as pl
from jax.experimental.pallas import tpu as pltpu


def _layer_norm(v, w, b, eps=1e-5):
    mu = jnp.mean(v, axis=-1, keepdims=True)
    var = jnp.mean(jnp.square(v - mu), axis=-1, keepdims=True)
    return (v - mu) * lax.rsqrt(var + eps) * w + b


def _mm(a, w):
    # bf16 MXU matmul, f32 accumulation.
    return jnp.dot(a.astype(jnp.bfloat16), w.astype(jnp.bfloat16),
                   preferred_element_type=jnp.float32)


# -----------------------------------------------------------------------------
# Fused per-(batch, layer) kernel body.  Grid = (B, num_layers); the residual
# stream lives in VMEM scratch across the layer axis, the output is written
# only on the last layer (accumulator pattern).
# -----------------------------------------------------------------------------
def mamba_encoder_kernel(x_ref, ln_w_ref, ln_b_ref, w_in_ref, conv_w_ref,
                         conv_b_ref, w_x_ref, w_dt_ref, b_dt_ref, a_log_ref,
                         d_p_ref, w_out_ref, fn_w_ref, fn_b_ref,
                         o_ref,
                         xres_ref, dA_ref, dB_ref,
                         *, seq_len, d_inner, d_state, dt_rank, conv_k):
    L, E, N, R, K = seq_len, d_inner, d_state, dt_rank, conv_k
    li = pl.program_id(1)
    f32 = jnp.float32
    cdt = dA_ref.dtype                                  # bf16 scan-coeff store

    @pl.when(li == 0)
    def _():
        xres_ref[...] = x_ref[...].astype(f32)

    x = xres_ref[...]                                   # (L, D) residual stream

    # ---- pre-LayerNorm + fused input projection (lane-dense, width 2E) -----
    h = _layer_norm(x, ln_w_ref[...], ln_b_ref[...])
    inz = _mm(h, w_in_ref[...])                         # (L, 2E)
    xin = inz[:, :E]
    z = inz[:, E:]

    # ---- causal depthwise conv1d + SiLU (shifted values, no scratch) -------
    cw = conv_w_ref[...]                                # (K, E)
    conv = xin * cw[K - 1:K, :]                         # tap K-1, shift 0
    for s in range(1, K):                               # tap K-1-s, shift s
        shifted = jnp.concatenate(
            [jnp.zeros((s, E), f32), xin[:L - s, :]], axis=0)
        conv = conv + shifted * cw[K - 1 - s:K - s, :]
    conv = conv + conv_b_ref[...]
    xc = conv * jax.nn.sigmoid(conv)                    # SiLU, (L, E)

    # ---- fused SSM parameter projection (single lane-dense matmul) ---------
    proj = _mm(xc, w_x_ref[...])                        # (L, R + 2N)
    dtr = proj[:, :R]
    Bm = proj[:, R:R + N]                               # (L, N)
    Cm = proj[:, R + N:R + 2 * N]                       # (L, N)
    dt = jax.nn.softplus(_mm(dtr, w_dt_ref[...]) + b_dt_ref[...])   # (L, E)
    A = -jnp.exp(a_log_ref[...])                        # (N, E)
    dtxc = dt * xc                                      # (L, E)

    # single small XLU transpose: move the N axis of Bm from lanes to sublanes
    BmT = jnp.transpose(Bm)                             # (N, L)

    # ---- precompute scan coefficients (exp hoisted off the serial chain) ---
    # Scratch row layout: row = t * N + n.
    for t in range(L):
        sl = slice(t * N, (t + 1) * N)
        dA_ref[sl, :] = jnp.exp(dt[t:t + 1, :] * A).astype(cdt)
        dB_ref[sl, :] = (dtxc[t:t + 1, :] * BmT[:, t:t + 1]).astype(cdt)

    # ---- selective scan: multiply-add only; h states stored in place -------
    def scan_step(t, hprev):
        rows = pl.ds(pl.multiple_of(t * N, N), N)
        hcur = (dA_ref[rows, :].astype(f32) * hprev
                + dB_ref[rows, :].astype(f32))
        dB_ref[rows, :] = hcur.astype(cdt)              # dB reused as h store
        return hcur

    lax.fori_loop(0, L, scan_step, jnp.zeros((N, E), f32), unroll=True)

    # ---- C-contraction (small MXU matmuls), D skip, gate, out-proj, residual
    y = jnp.concatenate(
        [jnp.dot(Cm[t:t + 1, :].astype(jnp.bfloat16),
                 dB_ref[t * N:(t + 1) * N, :],
                 preferred_element_type=f32)
         for t in range(L)], axis=0)                    # (L, E)
    y = y + xc * d_p_ref[...]
    y = y * (z * jax.nn.sigmoid(z))
    x_new = x + _mm(y, w_out_ref[...])                  # (L, D)
    xres_ref[...] = x_new

    # ---- final LayerNorm (self.norm) after the last layer -------------------
    @pl.when(li == pl.num_programs(1) - 1)
    def _():
        o_ref[...] = _layer_norm(x_new, fn_w_ref[...],
                                 fn_b_ref[...]).astype(o_ref.dtype)


# -----------------------------------------------------------------------------
# MambaEncoder.forward (mask / src_key_padding_mask / pos are unused in the
# reference forward and therefore omitted).
# -----------------------------------------------------------------------------
def mamba_encoder_forward(src, layer_params, norm_w, norm_b):
    B, L, D = src.shape
    (ln_w, ln_b, w_in_x, w_in_z, conv_w, conv_b, w_x_dt, w_x_b, w_x_c,
     w_dt, b_dt, a_log, d_p, w_out) = layer_params
    nL = ln_w.shape[0]
    E = w_in_x.shape[2]
    N = w_x_b.shape[2]
    R = w_x_dt.shape[2]
    K = conv_w.shape[1]

    # Lane-dense fused projection weights (wrapper-side packing only).
    w_in = jnp.concatenate([w_in_x, w_in_z], axis=-1)           # (nL, D, 2E)
    w_x = jnp.concatenate([w_x_dt, w_x_b, w_x_c], axis=-1)      # (nL, E, R+2N)

    layer_weights = (ln_w, ln_b, w_in, conv_w, conv_b, w_x, w_dt, b_dt,
                     a_log, d_p, w_out)

    def layer_spec(a):
        nd = a.ndim
        return pl.BlockSpec((None,) + a.shape[1:],
                            lambda b, li, n=nd: (li,) + (0,) * (n - 1))

    in_specs = ([pl.BlockSpec((None, L, D), lambda b, li: (b, 0, 0))]
                + [layer_spec(w) for w in layer_weights]
                + [pl.BlockSpec((1, D), lambda b, li: (0, 0)),
                   pl.BlockSpec((1, D), lambda b, li: (0, 0))])

    kernel = functools.partial(
        mamba_encoder_kernel, seq_len=L, d_inner=E, d_state=N,
        dt_rank=R, conv_k=K)

    out = pl.pallas_call(
        kernel,
        out_shape=jax.ShapeDtypeStruct((B, L, D), src.dtype),
        grid=(B, nL),
        in_specs=in_specs,
        out_specs=pl.BlockSpec((None, L, D), lambda b, li: (b, 0, 0)),
        scratch_shapes=[
            pltpu.VMEM((L, D), jnp.float32),            # residual (carried)
            pltpu.VMEM((L * N, E), jnp.bfloat16),       # exp(dt * A)
            pltpu.VMEM((L * N, E), jnp.bfloat16),       # dt*x*B, then h states
        ],
        compiler_params=pltpu.CompilerParams(
            dimension_semantics=("parallel", "arbitrary"),
            vmem_limit_bytes=32 * 1024 * 1024),
    )(src, *layer_weights, norm_w, norm_b)
    return out


# -----------------------------------------------------------------------------
# Pure-JAX reference (f32) for the correctness check.
# -----------------------------------------------------------------------------
def mamba_encoder_reference(src, layer_params, norm_w, norm_b):
    (ln_w, ln_b, w_in_x, w_in_z, conv_w, conv_b, w_x_dt, w_x_b, w_x_c,
     w_dt, b_dt, a_log, d_p, w_out) = [
        jnp.asarray(p, jnp.float32) for p in layer_params]
    nL = ln_w.shape[0]
    K = conv_w.shape[1]
    hp = lax.Precision.HIGHEST

    def layer_norm(v, w, b):
        mu = jnp.mean(v, axis=-1, keepdims=True)
        var = jnp.mean(jnp.square(v - mu), axis=-1, keepdims=True)
        return (v - mu) * lax.rsqrt(var + 1e-5) * w + b

    x = src.astype(jnp.float32)                                     # (B, L, D)
    B, L, _ = x.shape
    for li in range(nL):
        h = layer_norm(x, ln_w[li], ln_b[li])
        xin = jnp.einsum('bld,de->ble', h, w_in_x[li], precision=hp)
        z = jnp.einsum('bld,de->ble', h, w_in_z[li], precision=hp)
        E = xin.shape[-1]
        xpad = jnp.concatenate(
            [jnp.zeros((B, K - 1, E), jnp.float32), xin], axis=1)
        conv = sum(xpad[:, k:k + L, :] * conv_w[li][k] for k in range(K))
        conv = conv + conv_b[li]
        xc = conv * jax.nn.sigmoid(conv)
        dt = jax.nn.softplus(
            jnp.einsum('blr,re->ble',
                       jnp.einsum('ble,er->blr', xc, w_x_dt[li], precision=hp),
                       w_dt[li], precision=hp) + b_dt[li])
        Bm = jnp.einsum('ble,en->bln', xc, w_x_b[li], precision=hp)
        Cm = jnp.einsum('ble,en->bln', xc, w_x_c[li], precision=hp)
        A = -jnp.exp(a_log[li])                                     # (N, E)
        N = A.shape[0]
        dA = jnp.exp(dt[:, :, None, :] * A[None, None])             # (B,L,N,E)
        dB = (dt * xc)[:, :, None, :] * Bm[..., None]               # (B,L,N,E)

        def step(h_prev, ab):
            a_t, b_t = ab
            h_cur = a_t * h_prev + b_t
            return h_cur, h_cur

        _, hs = lax.scan(step, jnp.zeros((B, N, E), jnp.float32),
                         (jnp.swapaxes(dA, 0, 1), jnp.swapaxes(dB, 0, 1)))
        hs = jnp.swapaxes(hs, 0, 1)                                 # (B,L,N,E)
        y = jnp.sum(hs * Cm[..., None], axis=2)                     # (B, L, E)
        y = y + xc * d_p[li]
        y = y * (z * jax.nn.sigmoid(z))
        x = x + jnp.einsum('ble,ed->bld', y, w_out[li], precision=hp)
    return layer_norm(x, norm_w.astype(jnp.float32),
                      norm_b.astype(jnp.float32))


# -----------------------------------------------------------------------------
# Deterministic synthetic parameters (no checkpoint).  Matmul weights in bf16.
# -----------------------------------------------------------------------------
def init_layer_params(key, D, E, N, R, K):
    ks = jax.random.split(key, 8)
    bf = jnp.bfloat16
    ln_w = jnp.ones((1, D), jnp.float32)
    ln_b = jnp.zeros((1, D), jnp.float32)
    w_in_x = (jax.random.normal(ks[0], (D, E)) / jnp.sqrt(D)).astype(bf)
    w_in_z = (jax.random.normal(ks[1], (D, E)) / jnp.sqrt(D)).astype(bf)
    conv_w = jax.random.normal(ks[2], (K, E)) / jnp.sqrt(K)
    conv_b = jnp.zeros((1, E), jnp.float32)
    w_x_dt = (jax.random.normal(ks[3], (E, R)) / jnp.sqrt(E)).astype(bf)
    w_x_b = (jax.random.normal(ks[4], (E, N)) / jnp.sqrt(E)).astype(bf)
    w_x_c = (jax.random.normal(ks[5], (E, N)) / jnp.sqrt(E)).astype(bf)
    w_dt = (jax.random.normal(ks[6], (R, E)) / jnp.sqrt(R)).astype(bf)
    b_dt = jnp.full((1, E), -2.0, jnp.float32)
    a_log = jnp.log(jnp.broadcast_to(
        jnp.arange(1, N + 1, dtype=jnp.float32)[:, None], (N, E)))
    d_p = jnp.ones((1, E), jnp.float32)
    w_out = (0.5 * jax.random.normal(ks[7], (E, D)) / jnp.sqrt(E)).astype(bf)
    return (ln_w, ln_b, w_in_x, w_in_z, conv_w, conv_b,
            w_x_dt, w_x_b, w_x_c, w_dt, b_dt, a_log, d_p, w_out)


def stack_layers(layer_list):
    return tuple(jnp.stack(ws, axis=0) for ws in zip(*layer_list))


if __name__ == "__main__":
    B, L, D = 2, 8, 32          # batch, sequence, d_model
    E, N, R, K = 64, 16, 8, 4   # d_inner, d_state, dt_rank, conv kernel
    num_layers = 2

    key = jax.random.PRNGKey(0)
    kx, kp = jax.random.split(key)
    src = jax.random.normal(kx, (B, L, D), jnp.float32)

    layer_keys = jax.random.split(kp, num_layers)
    layer_params = stack_layers(
        [init_layer_params(layer_keys[i], D, E, N, R, K)
         for i in range(num_layers)])
    norm_w = jnp.ones((1, D), jnp.float32)
    norm_b = jnp.zeros((1, D), jnp.float32)

    fwd = jax.jit(mamba_encoder_forward)
    out = jax.block_until_ready(fwd(src, layer_params, norm_w, norm_b))
    ref = jax.block_until_ready(
        mamba_encoder_reference(src, layer_params, norm_w, norm_b))

    assert out.shape == (B, L, D)
    assert bool(jnp.all(jnp.isfinite(out)))
    # Tolerance covers bf16 matmul rounding + bf16 scan-coefficient storage;
    # structural errors would be O(1).
    max_err = float(jnp.max(jnp.abs(out - ref)))
    assert bool(jnp.allclose(out, ref, atol=1e-1, rtol=1e-1)), max_err
    print("KERNEL_OK")
</pallas_src>

<mosaic_0001>
module attributes {stable_mosaic.version = 11 : i64} {
  func.func @mamba_encoder_kernel(%arg0: i32, %arg1: i32, %arg2: memref<1x8x32xf32, #tpu.memory_space<vmem>>, %arg3: memref<1x1x32xf32, #tpu.memory_space<vmem>>, %arg4: memref<1x1x32xf32, #tpu.memory_space<vmem>>, %arg5: memref<1x32x128xbf16, #tpu.memory_space<vmem>>, %arg6: memref<1x4x64xf32, #tpu.memory_space<vmem>>, %arg7: memref<1x1x64xf32, #tpu.memory_space<vmem>>, %arg8: memref<1x64x40xbf16, #tpu.memory_space<vmem>>, %arg9: memref<1x8x64xbf16, #tpu.memory_space<vmem>>, %arg10: memref<1x1x64xf32, #tpu.memory_space<vmem>>, %arg11: memref<1x16x64xf32, #tpu.memory_space<vmem>>, %arg12: memref<1x1x64xf32, #tpu.memory_space<vmem>>, %arg13: memref<1x64x32xbf16, #tpu.memory_space<vmem>>, %arg14: memref<1x32xf32, #tpu.memory_space<vmem>>, %arg15: memref<1x32xf32, #tpu.memory_space<vmem>>, %arg16: memref<1x8x32xf32, #tpu.memory_space<vmem>>, %arg17: memref<8x32xf32, #tpu.memory_space<vmem>>, %arg18: memref<128x64xbf16, #tpu.memory_space<vmem>>, %arg19: memref<128x64xbf16, #tpu.memory_space<vmem>>) attributes {dimension_semantics = [#tpu.dimension_semantics<parallel>, #tpu.dimension_semantics<arbitrary>], iteration_bounds = array<i64: 2, 2>, scalar_prefetch = 0 : i64, scratch_operands = 3 : i64, tpu.core_type = #tpu.core_type<tc>, window_params = [{transform_indices = @transform_0, window_bounds = array<i64: 1, 8, 32>}, {transform_indices = @transform_1, window_bounds = array<i64: 1, 1, 32>}, {transform_indices = @transform_2, window_bounds = array<i64: 1, 1, 32>}, {transform_indices = @transform_3, window_bounds = array<i64: 1, 32, 128>}, {transform_indices = @transform_4, window_bounds = array<i64: 1, 4, 64>}, {transform_indices = @transform_5, window_bounds = array<i64: 1, 1, 64>}, {transform_indices = @transform_6, window_bounds = array<i64: 1, 64, 40>}, {transform_indices = @transform_7, window_bounds = array<i64: 1, 8, 64>}, {transform_indices = @transform_8, window_bounds = array<i64: 1, 1, 64>}, {transform_indices = @transform_9, window_bounds = array<i64: 1, 16, 64>}, {transform_indices = @transform_10, window_bounds = array<i64: 1, 1, 64>}, {transform_indices = @transform_11, window_bounds = array<i64: 1, 64, 32>}, {pipeline_mode = #tpu.pipeline_mode<synchronous>, transform_indices = @transform_12, window_bounds = array<i64: 1, 32>}, {pipeline_mode = #tpu.pipeline_mode<synchronous>, transform_indices = @transform_13, window_bounds = array<i64: 1, 32>}, {transform_indices = @transform_14, window_bounds = array<i64: 1, 8, 32>}]} {
    %c0_i32 = arith.constant 0 : i32
    %0 = arith.cmpi eq, %arg1, %c0_i32 : i32
    %1 = arith.extui %0 : i1 to i32
    %c0_i32_0 = arith.constant 0 : i32
    %2 = arith.cmpi ne, %1, %c0_i32_0 : i32
    scf.if %2 {
      %c0_137 = arith.constant 0 : index
      %c0_138 = arith.constant 0 : index
      %c0_139 = arith.constant 0 : index
      %371 = vector.load %arg2[%c0_137, %c0_138, %c0_139] : memref<1x8x32xf32, #tpu.memory_space<vmem>>, vector<1x8x32xf32>
      %372 = vector.shape_cast %371 : vector<1x8x32xf32> to vector<8x32xf32>
      %c0_140 = arith.constant 0 : index
      %c0_141 = arith.constant 0 : index
      %373 = vector.load %arg17[%c0_140, %c0_141] : memref<8x32xf32, #tpu.memory_space<vmem>>, vector<8x32xf32>
      tpu.vector_store %arg17[%c0_140, %c0_141], %372 {strides = array<i32>} : memref<8x32xf32, #tpu.memory_space<vmem>>, vector<8x32xf32>,
    } else {
    }
    %c0 = arith.constant 0 : index
    %c0_1 = arith.constant 0 : index
    %3 = vector.load %arg17[%c0, %c0_1] : memref<8x32xf32, #tpu.memory_space<vmem>>, vector<8x32xf32>
    %c0_2 = arith.constant 0 : index
    %c0_3 = arith.constant 0 : index
    %c0_4 = arith.constant 0 : index
    %4 = vector.load %arg3[%c0_2, %c0_3, %c0_4] : memref<1x1x32xf32, #tpu.memory_space<vmem>>, vector<1x1x32xf32>
    %5 = vector.shape_cast %4 : vector<1x1x32xf32> to vector<1x32xf32>
    %c0_5 = arith.constant 0 : index
    %c0_6 = arith.constant 0 : index
    %c0_7 = arith.constant 0 : index
    %6 = vector.load %arg4[%c0_5, %c0_6, %c0_7] : memref<1x1x32xf32, #tpu.memory_space<vmem>>, vector<1x1x32xf32>
    %7 = vector.shape_cast %6 : vector<1x1x32xf32> to vector<1x32xf32>
    %cst = arith.constant dense<0.000000e+00> : vector<8xf32>
    %8 = vector.multi_reduction <add>, %3, %cst [1] : vector<8x32xf32> to vector<8xf32>
    %9 = vector.shape_cast %8 : vector<8xf32> to vector<8x1xf32>
    %cst_8 = arith.constant 3.200000e+01 : f32
    %10 = vector.broadcast %cst_8 : f32 to vector<8x1xf32>
    %11 = arith.divf %9, %10 : vector<8x1xf32>
    %12 = vector.broadcast %11 : vector<8x1xf32> to vector<8x32xf32>
    %13 = arith.subf %3, %12 : vector<8x32xf32>
    %14 = arith.mulf %13, %13 : vector<8x32xf32>
    %cst_9 = arith.constant dense<0.000000e+00> : vector<8xf32>
    %15 = vector.multi_reduction <add>, %14, %cst_9 [1] : vector<8x32xf32> to vector<8xf32>
    %16 = vector.shape_cast %15 : vector<8xf32> to vector<8x1xf32>
    %cst_10 = arith.constant 3.200000e+01 : f32
    %17 = vector.broadcast %cst_10 : f32 to vector<8x1xf32>
    %18 = arith.divf %16, %17 : vector<8x1xf32>
    %19 = vector.broadcast %11 : vector<8x1xf32> to vector<8x32xf32>
    %20 = arith.subf %3, %19 : vector<8x32xf32>
    %cst_11 = arith.constant 9.99999974E-6 : f32
    %21 = vector.broadcast %cst_11 : f32 to vector<8x1xf32>
    %22 = arith.addf %18, %21 : vector<8x1xf32>
    %23 = math.rsqrt %22 : vector<8x1xf32>
    %24 = vector.broadcast %23 : vector<8x1xf32> to vector<8x32xf32>
    %25 = arith.mulf %20, %24 : vector<8x32xf32>
    %26 = vector.broadcast %5 : vector<1x32xf32> to vector<8x32xf32>
    %27 = arith.mulf %25, %26 : vector<8x32xf32>
    %28 = vector.broadcast %7 : vector<1x32xf32> to vector<8x32xf32>
    %29 = arith.addf %27, %28 : vector<8x32xf32>
    %c0_12 = arith.constant 0 : index
    %c0_13 = arith.constant 0 : index
    %c0_14 = arith.constant 0 : index
    %30 = vector.load %arg5[%c0_12, %c0_13, %c0_14] : memref<1x32x128xbf16, #tpu.memory_space<vmem>>, vector<1x32x128xbf16>
    %31 = vector.shape_cast %30 : vector<1x32x128xbf16> to vector<32x128xbf16>
    %32 = arith.truncf %29 : vector<8x32xf32> to vector<8x32xbf16>
    %cst_15 = arith.constant dense<0.000000e+00> : vector<8x128xf32>
    %33 = tpu.matmul %32, %31, %cst_15 {dimension_numbers = #tpu.dot_dimension_numbers<[1], [0], [0], [1], [0, 0, 1, 1], [], []>} : vector<8x32xbf16>, vector<32x128xbf16>, vector<8x128xf32> -> vector<8x128xf32>
    %34 = vector.extract_strided_slice %33 {offsets = [0, 0], sizes = [8, 64], strides = [1, 1]} : vector<8x128xf32> to vector<8x64xf32>
    %35 = vector.extract_strided_slice %33 {offsets = [0, 64], sizes = [8, 64], strides = [1, 1]} : vector<8x128xf32> to vector<8x64xf32>
    %c0_16 = arith.constant 0 : index
    %c0_17 = arith.constant 0 : index
    %c0_18 = arith.constant 0 : index
    %36 = vector.load %arg6[%c0_16, %c0_17, %c0_18] : memref<1x4x64xf32, #tpu.memory_space<vmem>>, vector<1x4x64xf32>
    %37 = vector.shape_cast %36 : vector<1x4x64xf32> to vector<4x64xf32>
    %38 = vector.extract_strided_slice %37 {offsets = [3, 0], sizes = [1, 64], strides = [1, 1]} : vector<4x64xf32> to vector<1x64xf32>
    %39 = vector.broadcast %38 : vector<1x64xf32> to vector<8x64xf32>
    %40 = arith.mulf %34, %39 : vector<8x64xf32>
    %cst_19 = arith.constant 0.000000e+00 : f32
    %41 = vector.broadcast %cst_19 : f32 to vector<1x64xf32>
    %42 = vector.extract_strided_slice %34 {offsets = [0, 0], sizes = [7, 64], strides = [1, 1]} : vector<8x64xf32> to vector<7x64xf32>
    %43 = tpu.concatenate %41, %42 in 0 : vector<1x64xf32>, vector<7x64xf32> -> vector<8x64xf32>
    %44 = vector.extract_strided_slice %37 {offsets = [2, 0], sizes = [1, 64], strides = [1, 1]} : vector<4x64xf32> to vector<1x64xf32>
    %45 = vector.broadcast %44 : vector<1x64xf32> to vector<8x64xf32>
    %46 = arith.mulf %43, %45 : vector<8x64xf32>
    %47 = arith.addf %40, %46 : vector<8x64xf32>
    %cst_20 = arith.constant 0.000000e+00 : f32
    %48 = vector.broadcast %cst_20 : f32 to vector<2x64xf32>
    %49 = vector.extract_strided_slice %34 {offsets = [0, 0], sizes = [6, 64], strides = [1, 1]} : vector<8x64xf32> to vector<6x64xf32>
    %50 = tpu.concatenate %48, %49 in 0 : vector<2x64xf32>, vector<6x64xf32> -> vector<8x64xf32>
    %51 = vector.extract_strided_slice %37 {offsets = [1, 0], sizes = [1, 64], strides = [1, 1]} : vector<4x64xf32> to vector<1x64xf32>
    %52 = vector.broadcast %51 : vector<1x64xf32> to vector<8x64xf32>
    %53 = arith.mulf %50, %52 : vector<8x64xf32>
    %54 = arith.addf %47, %53 : vector<8x64xf32>
    %cst_21 = arith.constant 0.000000e+00 : f32
    %55 = vector.broadcast %cst_21 : f32 to vector<3x64xf32>
    %56 = vector.extract_strided_slice %34 {offsets = [0, 0], sizes = [5, 64], strides = [1, 1]} : vector<8x64xf32> to vector<5x64xf32>
    %57 = tpu.concatenate %55, %56 in 0 : vector<3x64xf32>, vector<5x64xf32> -> vector<8x64xf32>
    %58 = vector.extract_strided_slice %37 {offsets = [0, 0], sizes = [1, 64], strides = [1, 1]} : vector<4x64xf32> to vector<1x64xf32>
    %59 = vector.broadcast %58 : vector<1x64xf32> to vector<8x64xf32>
    %60 = arith.mulf %57, %59 : vector<8x64xf32>
    %61 = arith.addf %54, %60 : vector<8x64xf32>
    %c0_22 = arith.constant 0 : index
    %c0_23 = arith.constant 0 : index
    %c0_24 = arith.constant 0 : index
    %62 = vector.load %arg7[%c0_22, %c0_23, %c0_24] : memref<1x1x64xf32, #tpu.memory_space<vmem>>, vector<1x1x64xf32>
    %63 = vector.shape_cast %62 : vector<1x1x64xf32> to vector<1x64xf32>
    %64 = vector.broadcast %63 : vector<1x64xf32> to vector<8x64xf32>
    %65 = arith.addf %61, %64 : vector<8x64xf32>
    %66 = arith.negf %65 : vector<8x64xf32>
    %67 = math.exp %66 : vector<8x64xf32>
    %cst_25 = arith.constant 1.000000e+00 : f32
    %68 = vector.broadcast %cst_25 : f32 to vector<8x64xf32>
    %69 = arith.addf %68, %67 : vector<8x64xf32>
    %70 = arith.divf %68, %69 : vector<8x64xf32>
    %71 = arith.mulf %65, %70 : vector<8x64xf32>
    %c0_26 = arith.constant 0 : index
    %c0_27 = arith.constant 0 : index
    %c0_28 = arith.constant 0 : index
    %72 = vector.load %arg8[%c0_26, %c0_27, %c0_28] : memref<1x64x40xbf16, #tpu.memory_space<vmem>>, vector<1x64x40xbf16>
    %73 = vector.shape_cast %72 : vector<1x64x40xbf16> to vector<64x40xbf16>
    %74 = arith.truncf %71 : vector<8x64xf32> to vector<8x64xbf16>
    %cst_29 = arith.constant dense<0.000000e+00> : vector<8x40xf32>
    %75 = tpu.matmul %74, %73, %cst_29 {dimension_numbers = #tpu.dot_dimension_numbers<[1], [0], [0], [1], [0, 0, 1, 1], [], []>} : vector<8x64xbf16>, vector<64x40xbf16>, vector<8x40xf32> -> vector<8x40xf32>
    %76 = vector.extract_strided_slice %75 {offsets = [0, 0], sizes = [8, 8], strides = [1, 1]} : vector<8x40xf32> to vector<8x8xf32>
    %77 = vector.extract_strided_slice %75 {offsets = [0, 8], sizes = [8, 16], strides = [1, 1]} : vector<8x40xf32> to vector<8x16xf32>
    %78 = vector.extract_strided_slice %75 {offsets = [0, 24], sizes = [8, 16], strides = [1, 1]} : vector<8x40xf32> to vector<8x16xf32>
    %c0_30 = arith.constant 0 : index
    %c0_31 = arith.constant 0 : index
    %c0_32 = arith.constant 0 : index
    %79 = vector.load %arg9[%c0_30, %c0_31, %c0_32] : memref<1x8x64xbf16, #tpu.memory_space<vmem>>, vector<1x8x64xbf16>
    %80 = vector.shape_cast %79 : vector<1x8x64xbf16> to vector<8x64xbf16>
    %81 = arith.truncf %76 : vector<8x8xf32> to vector<8x8xbf16>
    %cst_33 = arith.constant dense<0.000000e+00> : vector<8x64xf32>
    %82 = tpu.matmul %81, %80, %cst_33 {dimension_numbers = #tpu.dot_dimension_numbers<[1], [0], [0], [1], [0, 0, 1, 1], [], []>} : vector<8x8xbf16>, vector<8x64xbf16>, vector<8x64xf32> -> vector<8x64xf32>
    %c0_34 = arith.constant 0 : index
    %c0_35 = arith.constant 0 : index
    %c0_36 = arith.constant 0 : index
    %83 = vector.load %arg10[%c0_34, %c0_35, %c0_36] : memref<1x1x64xf32, #tpu.memory_space<vmem>>, vector<1x1x64xf32>
    %84 = vector.shape_cast %83 : vector<1x1x64xf32> to vector<1x64xf32>
    %85 = vector.broadcast %84 : vector<1x64xf32> to vector<8x64xf32>
    %86 = arith.addf %82, %85 : vector<8x64xf32>
    %cst_37 = arith.constant 0.000000e+00 : f32
    %87 = vector.broadcast %cst_37 : f32 to vector<8x64xf32>
    %88 = arith.maximumf %86, %87 : vector<8x64xf32>
    %89 = vector.broadcast %cst_37 : f32 to vector<8x64xf32>
    %90 = arith.subf %86, %89 : vector<8x64xf32>
    %91 = arith.cmpf one, %90, %90 : vector<8x64xf32>
    %92 = vector.broadcast %cst_37 : f32 to vector<8x64xf32>
    %93 = arith.addf %86, %92 : vector<8x64xf32>
    %94 = math.absf %90 : vector<8x64xf32>
    %cst_38 = arith.constant 0.000000e+00 : f32
    %95 = vector.broadcast %cst_38 : f32 to vector<8x64xf32>
    %96 = arith.subf %95, %94 : vector<8x64xf32>
    %97 = math.exp %96 : vector<8x64xf32>
    %98 = math.log1p %97 : vector<8x64xf32>
    %99 = arith.addf %88, %98 : vector<8x64xf32>
    %100 = arith.select %91, %93, %99 : vector<8x64xi1>, vector<8x64xf32>
    %c0_39 = arith.constant 0 : index
    %c0_40 = arith.constant 0 : index
    %c0_41 = arith.constant 0 : index
    %101 = vector.load %arg11[%c0_39, %c0_40, %c0_41] : memref<1x16x64xf32, #tpu.memory_space<vmem>>, vector<1x16x64xf32>
    %102 = vector.shape_cast %101 : vector<1x16x64xf32> to vector<16x64xf32>
    %103 = math.exp %102 : vector<16x64xf32>
    %cst_42 = arith.constant 0.000000e+00 : f32
    %104 = vector.broadcast %cst_42 : f32 to vector<16x64xf32>
    %105 = arith.subf %104, %103 : vector<16x64xf32>
    %106 = arith.mulf %100, %71 : vector<8x64xf32>
    %107 = tpu.transpose %77, [1, 0] : vector<8x16xf32> -> vector<16x8xf32>
    %108 = vector.extract_strided_slice %100 {offsets = [0, 0], sizes = [1, 64], strides = [1, 1]} : vector<8x64xf32> to vector<1x64xf32>
    %109 = vector.broadcast %108 : vector<1x64xf32> to vector<16x64xf32>
    %110 = arith.mulf %109, %105 : vector<16x64xf32>
    %111 = math.exp %110 : vector<16x64xf32>
    %112 = arith.truncf %111 : vector<16x64xf32> to vector<16x64xbf16>
    %c0_43 = arith.constant 0 : index
    %c0_44 = arith.constant 0 : index
    %113 = vector.load %arg18[%c0_43, %c0_44] : memref<128x64xbf16, #tpu.memory_space<vmem>>, vector<16x64xbf16>
    tpu.vector_store %arg18[%c0_43, %c0_44], %112 {strides = array<i32>} : memref<128x64xbf16, #tpu.memory_space<vmem>>, vector<16x64xbf16>,
    %114 = vector.extract_strided_slice %106 {offsets = [0, 0], sizes = [1, 64], strides = [1, 1]} : vector<8x64xf32> to vector<1x64xf32>
    %115 = vector.extract_strided_slice %107 {offsets = [0, 0], sizes = [16, 1], strides = [1, 1]} : vector<16x8xf32> to vector<16x1xf32>
    %116 = vector.broadcast %114 : vector<1x64xf32> to vector<16x64xf32>
    %117 = vector.broadcast %115 : vector<16x1xf32> to vector<16x64xf32>
    %118 = arith.mulf %116, %117 : vector<16x64xf32>
    %119 = arith.truncf %118 : vector<16x64xf32> to vector<16x64xbf16>
    %c0_45 = arith.constant 0 : index
    %c0_46 = arith.constant 0 : index
    %120 = vector.load %arg19[%c0_45, %c0_46] : memref<128x64xbf16, #tpu.memory_space<vmem>>, vector<16x64xbf16>
    tpu.vector_store %arg19[%c0_45, %c0_46], %119 {strides = array<i32>} : memref<128x64xbf16, #tpu.memory_space<vmem>>, vector<16x64xbf16>,
    %121 = vector.extract_strided_slice %100 {offsets = [1, 0], sizes = [1, 64], strides = [1, 1]} : vector<8x64xf32> to vector<1x64xf32>
    %122 = vector.broadcast %121 : vector<1x64xf32> to vector<16x64xf32>
    %123 = arith.mulf %122, %105 : vector<16x64xf32>
    %124 = math.exp %123 : vector<16x64xf32>
    %125 = arith.truncf %124 : vector<16x64xf32> to vector<16x64xbf16>
    %c16 = arith.constant 16 : index
    %c0_47 = arith.constant 0 : index
    %126 = vector.load %arg18[%c16, %c0_47] : memref<128x64xbf16, #tpu.memory_space<vmem>>, vector<16x64xbf16>
    tpu.vector_store %arg18[%c16, %c0_47], %125 {strides = array<i32>} : memref<128x64xbf16, #tpu.memory_space<vmem>>, vector<16x64xbf16>,
    %127 = vector.extract_strided_slice %106 {offsets = [1, 0], sizes = [1, 64], strides = [1, 1]} : vector<8x64xf32> to vector<1x64xf32>
    %128 = vector.extract_strided_slice %107 {offsets = [0, 1], sizes = [16, 1], strides = [1, 1]} : vector<16x8xf32> to vector<16x1xf32>
    %129 = vector.broadcast %127 : vector<1x64xf32> to vector<16x64xf32>
    %130 = vector.broadcast %128 : vector<16x1xf32> to vector<16x64xf32>
    %131 = arith.mulf %129, %130 : vector<16x64xf32>
    %132 = arith.truncf %131 : vector<16x64xf32> to vector<16x64xbf16>
    %c16_48 = arith.constant 16 : index
    %c0_49 = arith.constant 0 : index
    %133 = vector.load %arg19[%c16_48, %c0_49] : memref<128x64xbf16, #tpu.memory_space<vmem>>, vector<16x64xbf16>
    tpu.vector_store %arg19[%c16_48, %c0_49], %132 {strides = array<i32>} : memref<128x64xbf16, #tpu.memory_space<vmem>>, vector<16x64xbf16>,
    %134 = vector.extract_strided_slice %100 {offsets = [2, 0], sizes = [1, 64], strides = [1, 1]} : vector<8x64xf32> to vector<1x64xf32>
    %135 = vector.broadcast %134 : vector<1x64xf32> to vector<16x64xf32>
    %136 = arith.mulf %135, %105 : vector<16x64xf32>
    %137 = math.exp %136 : vector<16x64xf32>
    %138 = arith.truncf %137 : vector<16x64xf32> to vector<16x64xbf16>
    %c32 = arith.constant 32 : index
    %c0_50 = arith.constant 0 : index
    %139 = vector.load %arg18[%c32, %c0_50] : memref<128x64xbf16, #tpu.memory_space<vmem>>, vector<16x64xbf16>
    tpu.vector_store %arg18[%c32, %c0_50], %138 {strides = array<i32>} : memref<128x64xbf16, #tpu.memory_space<vmem>>, vector<16x64xbf16>,
    %140 = vector.extract_strided_slice %106 {offsets = [2, 0], sizes = [1, 64], strides = [1, 1]} : vector<8x64xf32> to vector<1x64xf32>
    %141 = vector.extract_strided_slice %107 {offsets = [0, 2], sizes = [16, 1], strides = [1, 1]} : vector<16x8xf32> to vector<16x1xf32>
    %142 = vector.broadcast %140 : vector<1x64xf32> to vector<16x64xf32>
    %143 = vector.broadcast %141 : vector<16x1xf32> to vector<16x64xf32>
    %144 = arith.mulf %142, %143 : vector<16x64xf32>
    %145 = arith.truncf %144 : vector<16x64xf32> to vector<16x64xbf16>
    %c32_51 = arith.constant 32 : index
    %c0_52 = arith.constant 0 : index
    %146 = vector.load %arg19[%c32_51, %c0_52] : memref<128x64xbf16, #tpu.memory_space<vmem>>, vector<16x64xbf16>
    tpu.vector_store %arg19[%c32_51, %c0_52], %145 {strides = array<i32>} : memref<128x64xbf16, #tpu.memory_space<vmem>>, vector<16x64xbf16>,
    %147 = vector.extract_strided_slice %100 {offsets = [3, 0], sizes = [1, 64], strides = [1, 1]} : vector<8x64xf32> to vector<1x64xf32>
    %148 = vector.broadcast %147 : vector<1x64xf32> to vector<16x64xf32>
    %149 = arith.mulf %148, %105 : vector<16x64xf32>
    %150 = math.exp %149 : vector<16x64xf32>
    %151 = arith.truncf %150 : vector<16x64xf32> to vector<16x64xbf16>
    %c48 = arith.constant 48 : index
    %c0_53 = arith.constant 0 : index
    %152 = vector.load %arg18[%c48, %c0_53] : memref<128x64xbf16, #tpu.memory_space<vmem>>, vector<16x64xbf16>
    tpu.vector_store %arg18[%c48, %c0_53], %151 {strides = array<i32>} : memref<128x64xbf16, #tpu.memory_space<vmem>>, vector<16x64xbf16>,
    %153 = vector.extract_strided_slice %106 {offsets = [3, 0], sizes = [1, 64], strides = [1, 1]} : vector<8x64xf32> to vector<1x64xf32>
    %154 = vector.extract_strided_slice %107 {offsets = [0, 3], sizes = [16, 1], strides = [1, 1]} : vector<16x8xf32> to vector<16x1xf32>
    %155 = vector.broadcast %153 : vector<1x64xf32> to vector<16x64xf32>
    %156 = vector.broadcast %154 : vector<16x1xf32> to vector<16x64xf32>
    %157 = arith.mulf %155, %156 : vector<16x64xf32>
    %158 = arith.truncf %157 : vector<16x64xf32> to vector<16x64xbf16>
    %c48_54 = arith.constant 48 : index
    %c0_55 = arith.constant 0 : index
    %159 = vector.load %arg19[%c48_54, %c0_55] : memref<128x64xbf16, #tpu.memory_space<vmem>>, vector<16x64xbf16>
    tpu.vector_store %arg19[%c48_54, %c0_55], %158 {strides = array<i32>} : memref<128x64xbf16, #tpu.memory_space<vmem>>, vector<16x64xbf16>,
    %160 = vector.extract_strided_slice %100 {offsets = [4, 0], sizes = [1, 64], strides = [1, 1]} : vector<8x64xf32> to vector<1x64xf32>
    %161 = vector.broadcast %160 : vector<1x64xf32> to vector<16x64xf32>
    %162 = arith.mulf %161, %105 : vector<16x64xf32>
    %163 = math.exp %162 : vector<16x64xf32>
    %164 = arith.truncf %163 : vector<16x64xf32> to vector<16x64xbf16>
    %c64 = arith.constant 64 : index
    %c0_56 = arith.constant 0 : index
    %165 = vector.load %arg18[%c64, %c0_56] : memref<128x64xbf16, #tpu.memory_space<vmem>>, vector<16x64xbf16>
    tpu.vector_store %arg18[%c64, %c0_56], %164 {strides = array<i32>} : memref<128x64xbf16, #tpu.memory_space<vmem>>, vector<16x64xbf16>,
    %166 = vector.extract_strided_slice %106 {offsets = [4, 0], sizes = [1, 64], strides = [1, 1]} : vector<8x64xf32> to vector<1x64xf32>
    %167 = vector.extract_strided_slice %107 {offsets = [0, 4], sizes = [16, 1], strides = [1, 1]} : vector<16x8xf32> to vector<16x1xf32>
    %168 = vector.broadcast %166 : vector<1x64xf32> to vector<16x64xf32>
    %169 = vector.broadcast %167 : vector<16x1xf32> to vector<16x64xf32>
    %170 = arith.mulf %168, %169 : vector<16x64xf32>
    %171 = arith.truncf %170 : vector<16x64xf32> to vector<16x64xbf16>
    %c64_57 = arith.constant 64 : index
    %c0_58 = arith.constant 0 : index
    %172 = vector.load %arg19[%c64_57, %c0_58] : memref<128x64xbf16, #tpu.memory_space<vmem>>, vector<16x64xbf16>
    tpu.vector_store %arg19[%c64_57, %c0_58], %171 {strides = array<i32>} : memref<128x64xbf16, #tpu.memory_space<vmem>>, vector<16x64xbf16>,
    %173 = vector.extract_strided_slice %100 {offsets = [5, 0], sizes = [1, 64], strides = [1, 1]} : vector<8x64xf32> to vector<1x64xf32>
    %174 = vector.broadcast %173 : vector<1x64xf32> to vector<16x64xf32>
    %175 = arith.mulf %174, %105 : vector<16x64xf32>
    %176 = math.exp %175 : vector<16x64xf32>
    %177 = arith.truncf %176 : vector<16x64xf32> to vector<16x64xbf16>
    %c80 = arith.constant 80 : index
    %c0_59 = arith.constant 0 : index
    %178 = vector.load %arg18[%c80, %c0_59] : memref<128x64xbf16, #tpu.memory_space<vmem>>, vector<16x64xbf16>
    tpu.vector_store %arg18[%c80, %c0_59], %177 {strides = array<i32>} : memref<128x64xbf16, #tpu.memory_space<vmem>>, vector<16x64xbf16>,
    %179 = vector.extract_strided_slice %106 {offsets = [5, 0], sizes = [1, 64], strides = [1, 1]} : vector<8x64xf32> to vector<1x64xf32>
    %180 = vector.extract_strided_slice %107 {offsets = [0, 5], sizes = [16, 1], strides = [1, 1]} : vector<16x8xf32> to vector<16x1xf32>
    %181 = vector.broadcast %179 : vector<1x64xf32> to vector<16x64xf32>
    %182 = vector.broadcast %180 : vector<16x1xf32> to vector<16x64xf32>
    %183 = arith.mulf %181, %182 : vector<16x64xf32>
    %184 = arith.truncf %183 : vector<16x64xf32> to vector<16x64xbf16>
    %c80_60 = arith.constant 80 : index
    %c0_61 = arith.constant 0 : index
    %185 = vector.load %arg19[%c80_60, %c0_61] : memref<128x64xbf16, #tpu.memory_space<vmem>>, vector<16x64xbf16>
    tpu.vector_store %arg19[%c80_60, %c0_61], %184 {strides = array<i32>} : memref<128x64xbf16, #tpu.memory_space<vmem>>, vector<16x64xbf16>,
    %186 = vector.extract_strided_slice %100 {offsets = [6, 0], sizes = [1, 64], strides = [1, 1]} : vector<8x64xf32> to vector<1x64xf32>
    %187 = vector.broadcast %186 : vector<1x64xf32> to vector<16x64xf32>
    %188 = arith.mulf %187, %105 : vector<16x64xf32>
    %189 = math.exp %188 : vector<16x64xf32>
    %190 = arith.truncf %189 : vector<16x64xf32> to vector<16x64xbf16>
    %c96 = arith.constant 96 : index
    %c0_62 = arith.constant 0 : index
    %191 = vector.load %arg18[%c96, %c0_62] : memref<128x64xbf16, #tpu.memory_space<vmem>>, vector<16x64xbf16>
    tpu.vector_store %arg18[%c96, %c0_62], %190 {strides = array<i32>} : memref<128x64xbf16, #tpu.memory_space<vmem>>, vector<16x64xbf16>,
    %192 = vector.extract_strided_slice %106 {offsets = [6, 0], sizes = [1, 64], strides = [1, 1]} : vector<8x64xf32> to vector<1x64xf32>
    %193 = vector.extract_strided_slice %107 {offsets = [0, 6], sizes = [16, 1], strides = [1, 1]} : vector<16x8xf32> to vector<16x1xf32>
    %194 = vector.broadcast %192 : vector<1x64xf32> to vector<16x64xf32>
    %195 = vector.broadcast %193 : vector<16x1xf32> to vector<16x64xf32>
    %196 = arith.mulf %194, %195 : vector<16x64xf32>
    %197 = arith.truncf %196 : vector<16x64xf32> to vector<16x64xbf16>
    %c96_63 = arith.constant 96 : index
    %c0_64 = arith.constant 0 : index
    %198 = vector.load %arg19[%c96_63, %c0_64] : memref<128x64xbf16, #tpu.memory_space<vmem>>, vector<16x64xbf16>
    tpu.vector_store %arg19[%c96_63, %c0_64], %197 {strides = array<i32>} : memref<128x64xbf16, #tpu.memory_space<vmem>>, vector<16x64xbf16>,
    %199 = vector.extract_strided_slice %100 {offsets = [7, 0], sizes = [1, 64], strides = [1, 1]} : vector<8x64xf32> to vector<1x64xf32>
    %200 = vector.broadcast %199 : vector<1x64xf32> to vector<16x64xf32>
    %201 = arith.mulf %200, %105 : vector<16x64xf32>
    %202 = math.exp %201 : vector<16x64xf32>
    %203 = arith.truncf %202 : vector<16x64xf32> to vector<16x64xbf16>
    %c112 = arith.constant 112 : index
    %c0_65 = arith.constant 0 : index
    %204 = vector.load %arg18[%c112, %c0_65] : memref<128x64xbf16, #tpu.memory_space<vmem>>, vector<16x64xbf16>
    tpu.vector_store %arg18[%c112, %c0_65], %203 {strides = array<i32>} : memref<128x64xbf16, #tpu.memory_space<vmem>>, vector<16x64xbf16>,
    %205 = vector.extract_strided_slice %106 {offsets = [7, 0], sizes = [1, 64], strides = [1, 1]} : vector<8x64xf32> to vector<1x64xf32>
    %206 = vector.extract_strided_slice %107 {offsets = [0, 7], sizes = [16, 1], strides = [1, 1]} : vector<16x8xf32> to vector<16x1xf32>
    %207 = vector.broadcast %205 : vector<1x64xf32> to vector<16x64xf32>
    %208 = vector.broadcast %206 : vector<16x1xf32> to vector<16x64xf32>
    %209 = arith.mulf %207, %208 : vector<16x64xf32>
    %210 = arith.truncf %209 : vector<16x64xf32> to vector<16x64xbf16>
    %c112_66 = arith.constant 112 : index
    %c0_67 = arith.constant 0 : index
    %211 = vector.load %arg19[%c112_66, %c0_67] : memref<128x64xbf16, #tpu.memory_space<vmem>>, vector<16x64xbf16>
    tpu.vector_store %arg19[%c112_66, %c0_67], %210 {strides = array<i32>} : memref<128x64xbf16, #tpu.memory_space<vmem>>, vector<16x64xbf16>,
    %cst_68 = arith.constant 0.000000e+00 : f32
    %212 = vector.broadcast %cst_68 : f32 to vector<16x64xf32>
    %c0_i32_69 = arith.constant 0 : i32
    %c16_i32 = arith.constant 16 : i32
    %213 = arith.muli %c0_i32_69, %c16_i32 : i32
    %214 = tpu.assume_multiple %213, 16 : i32
    %215 = arith.index_cast %214 : i32 to index
    %c0_70 = arith.constant 0 : index
    %216 = vector.load %arg18[%215, %c0_70] : memref<128x64xbf16, #tpu.memory_space<vmem>>, vector<16x64xbf16>
    %217 = arith.extf %216 : vector<16x64xbf16> to vector<16x64xf32>
    %218 = arith.mulf %217, %212 : vector<16x64xf32>
    %219 = arith.index_cast %214 : i32 to index
    %c0_71 = arith.constant 0 : index
    %220 = vector.load %arg19[%219, %c0_71] : memref<128x64xbf16, #tpu.memory_space<vmem>>, vector<16x64xbf16>
    %221 = arith.extf %220 : vector<16x64xbf16> to vector<16x64xf32>
    %222 = arith.addf %218, %221 : vector<16x64xf32>
    %223 = arith.truncf %222 : vector<16x64xf32> to vector<16x64xbf16>
    %224 = arith.index_cast %214 : i32 to index
    %c0_72 = arith.constant 0 : index
    %225 = vector.load %arg19[%224, %c0_72] : memref<128x64xbf16, #tpu.memory_space<vmem>>, vector<16x64xbf16>
    tpu.vector_store %arg19[%224, %c0_72], %223 {strides = array<i32>} : memref<128x64xbf16, #tpu.memory_space<vmem>>, vector<16x64xbf16>,
    %c1_i32 = arith.constant 1 : i32
    %c16_i32_73 = arith.constant 16 : i32
    %226 = arith.muli %c1_i32, %c16_i32_73 : i32
    %227 = tpu.assume_multiple %226, 16 : i32
    %228 = arith.index_cast %227 : i32 to index
    %c0_74 = arith.constant 0 : index
    %229 = vector.load %arg18[%228, %c0_74] : memref<128x64xbf16, #tpu.memory_space<vmem>>, vector<16x64xbf16>
    %230 = arith.extf %229 : vector<16x64xbf16> to vector<16x64xf32>
    %231 = arith.mulf %230, %222 : vector<16x64xf32>
    %232 = arith.index_cast %227 : i32 to index
    %c0_75 = arith.constant 0 : index
    %233 = vector.load %arg19[%232, %c0_75] : memref<128x64xbf16, #tpu.memory_space<vmem>>, vector<16x64xbf16>
    %234 = arith.extf %233 : vector<16x64xbf16> to vector<16x64xf32>
    %235 = arith.addf %231, %234 : vector<16x64xf32>
    %236 = arith.truncf %235 : vector<16x64xf32> to vector<16x64xbf16>
    %237 = arith.index_cast %227 : i32 to index
    %c0_76 = arith.constant 0 : index
    %238 = vector.load %arg19[%237, %c0_76] : memref<128x64xbf16, #tpu.memory_space<vmem>>, vector<16x64xbf16>
    tpu.vector_store %arg19[%237, %c0_76], %236 {strides = array<i32>} : memref<128x64xbf16, #tpu.memory_space<vmem>>, vector<16x64xbf16>,
    %c2_i32 = arith.constant 2 : i32
    %c16_i32_77 = arith.constant 16 : i32
    %239 = arith.muli %c2_i32, %c16_i32_77 : i32
    %240 = tpu.assume_multiple %239, 16 : i32
    %241 = arith.index_cast %240 : i32 to index
    %c0_78 = arith.constant 0 : index
    %242 = vector.load %arg18[%241, %c0_78] : memref<128x64xbf16, #tpu.memory_space<vmem>>, vector<16x64xbf16>
    %243 = arith.extf %242 : vector<16x64xbf16> to vector<16x64xf32>
    %244 = arith.mulf %243, %235 : vector<16x64xf32>
    %245 = arith.index_cast %240 : i32 to index
    %c0_79 = arith.constant 0 : index
    %246 = vector.load %arg19[%245, %c0_79] : memref<128x64xbf16, #tpu.memory_space<vmem>>, vector<16x64xbf16>
    %247 = arith.extf %246 : vector<16x64xbf16> to vector<16x64xf32>
    %248 = arith.addf %244, %247 : vector<16x64xf32>
    %249 = arith.truncf %248 : vector<16x64xf32> to vector<16x64xbf16>
    %250 = arith.index_cast %240 : i32 to index
    %c0_80 = arith.constant 0 : index
    %251 = vector.load %arg19[%250, %c0_80] : memref<128x64xbf16, #tpu.memory_space<vmem>>, vector<16x64xbf16>
    tpu.vector_store %arg19[%250, %c0_80], %249 {strides = array<i32>} : memref<128x64xbf16, #tpu.memory_space<vmem>>, vector<16x64xbf16>,
    %c3_i32 = arith.constant 3 : i32
    %c16_i32_81 = arith.constant 16 : i32
    %252 = arith.muli %c3_i32, %c16_i32_81 : i32
    %253 = tpu.assume_multiple %252, 16 : i32
    %254 = arith.index_cast %253 : i32 to index
    %c0_82 = arith.constant 0 : index
    %255 = vector.load %arg18[%254, %c0_82] : memref<128x64xbf16, #tpu.memory_space<vmem>>, vector<16x64xbf16>
    %256 = arith.extf %255 : vector<16x64xbf16> to vector<16x64xf32>
    %257 = arith.mulf %256, %248 : vector<16x64xf32>
    %258 = arith.index_cast %253 : i32 to index
    %c0_83 = arith.constant 0 : index
    %259 = vector.load %arg19[%258, %c0_83] : memref<128x64xbf16, #tpu.memory_space<vmem>>, vector<16x64xbf16>
    %260 = arith.extf %259 : vector<16x64xbf16> to vector<16x64xf32>
    %261 = arith.addf %257, %260 : vector<16x64xf32>
    %262 = arith.truncf %261 : vector<16x64xf32> to vector<16x64xbf16>
    %263 = arith.index_cast %253 : i32 to index
    %c0_84 = arith.constant 0 : index
    %264 = vector.load %arg19[%263, %c0_84] : memref<128x64xbf16, #tpu.memory_space<vmem>>, vector<16x64xbf16>
    tpu.vector_store %arg19[%263, %c0_84], %262 {strides = array<i32>} : memref<128x64xbf16, #tpu.memory_space<vmem>>, vector<16x64xbf16>,
    %c4_i32 = arith.constant 4 : i32
    %c16_i32_85 = arith.constant 16 : i32
    %265 = arith.muli %c4_i32, %c16_i32_85 : i32
    %266 = tpu.assume_multiple %265, 16 : i32
    %267 = arith.index_cast %266 : i32 to index
    %c0_86 = arith.constant 0 : index
    %268 = vector.load %arg18[%267, %c0_86] : memref<128x64xbf16, #tpu.memory_space<vmem>>, vector<16x64xbf16>
    %269 = arith.extf %268 : vector<16x64xbf16> to vector<16x64xf32>
    %270 = arith.mulf %269, %261 : vector<16x64xf32>
    %271 = arith.index_cast %266 : i32 to index
    %c0_87 = arith.constant 0 : index
    %272 = vector.load %arg19[%271, %c0_87] : memref<128x64xbf16, #tpu.memory_space<vmem>>, vector<16x64xbf16>
    %273 = arith.extf %272 : vector<16x64xbf16> to vector<16x64xf32>
    %274 = arith.addf %270, %273 : vector<16x64xf32>
    %275 = arith.truncf %274 : vector<16x64xf32> to vector<16x64xbf16>
    %276 = arith.index_cast %266 : i32 to index
    %c0_88 = arith.constant 0 : index
    %277 = vector.load %arg19[%276, %c0_88] : memref<128x64xbf16, #tpu.memory_space<vmem>>, vector<16x64xbf16>
    tpu.vector_store %arg19[%276, %c0_88], %275 {strides = array<i32>} : memref<128x64xbf16, #tpu.memory_space<vmem>>, vector<16x64xbf16>,
    %c5_i32 = arith.constant 5 : i32
    %c16_i32_89 = arith.constant 16 : i32
    %278 = arith.muli %c5_i32, %c16_i32_89 : i32
    %279 = tpu.assume_multiple %278, 16 : i32
    %280 = arith.index_cast %279 : i32 to index
    %c0_90 = arith.constant 0 : index
    %281 = vector.load %arg18[%280, %c0_90] : memref<128x64xbf16, #tpu.memory_space<vmem>>, vector<16x64xbf16>
    %282 = arith.extf %281 : vector<16x64xbf16> to vector<16x64xf32>
    %283 = arith.mulf %282, %274 : vector<16x64xf32>
    %284 = arith.index_cast %279 : i32 to index
    %c0_91 = arith.constant 0 : index
    %285 = vector.load %arg19[%284, %c0_91] : memref<128x64xbf16, #tpu.memory_space<vmem>>, vector<16x64xbf16>
    %286 = arith.extf %285 : vector<16x64xbf16> to vector<16x64xf32>
    %287 = arith.addf %283, %286 : vector<16x64xf32>
    %288 = arith.truncf %287 : vector<16x64xf32> to vector<16x64xbf16>
    %289 = arith.index_cast %279 : i32 to index
    %c0_92 = arith.constant 0 : index
    %290 = vector.load %arg19[%289, %c0_92] : memref<128x64xbf16, #tpu.memory_space<vmem>>, vector<16x64xbf16>
    tpu.vector_store %arg19[%289, %c0_92], %288 {strides = array<i32>} : memref<128x64xbf16, #tpu.memory_space<vmem>>, vector<16x64xbf16>,
    %c6_i32 = arith.constant 6 : i32
    %c16_i32_93 = arith.constant 16 : i32
    %291 = arith.muli %c6_i32, %c16_i32_93 : i32
    %292 = tpu.assume_multiple %291, 16 : i32
    %293 = arith.index_cast %292 : i32 to index
    %c0_94 = arith.constant 0 : index
    %294 = vector.load %arg18[%293, %c0_94] : memref<128x64xbf16, #tpu.memory_space<vmem>>, vector<16x64xbf16>
    %295 = arith.extf %294 : vector<16x64xbf16> to vector<16x64xf32>
    %296 = arith.mulf %295, %287 : vector<16x64xf32>
    %297 = arith.index_cast %292 : i32 to index
    %c0_95 = arith.constant 0 : index
    %298 = vector.load %arg19[%297, %c0_95] : memref<128x64xbf16, #tpu.memory_space<vmem>>, vector<16x64xbf16>
    %299 = arith.extf %298 : vector<16x64xbf16> to vector<16x64xf32>
    %300 = arith.addf %296, %299 : vector<16x64xf32>
    %301 = arith.truncf %300 : vector<16x64xf32> to vector<16x64xbf16>
    %302 = arith.index_cast %292 : i32 to index
    %c0_96 = arith.constant 0 : index
    %303 = vector.load %arg19[%302, %c0_96] : memref<128x64xbf16, #tpu.memory_space<vmem>>, vector<16x64xbf16>
    tpu.vector_store %arg19[%302, %c0_96], %301 {strides = array<i32>} : memref<128x64xbf16, #tpu.memory_space<vmem>>, vector<16x64xbf16>,
    %c7_i32 = arith.constant 7 : i32
    %c16_i32_97 = arith.constant 16 : i32
    %304 = arith.muli %c7_i32, %c16_i32_97 : i32
    %305 = tpu.assume_multiple %304, 16 : i32
    %306 = arith.index_cast %305 : i32 to index
    %c0_98 = arith.constant 0 : index
    %307 = vector.load %arg18[%306, %c0_98] : memref<128x64xbf16, #tpu.memory_space<vmem>>, vector<16x64xbf16>
    %308 = arith.extf %307 : vector<16x64xbf16> to vector<16x64xf32>
    %309 = arith.mulf %308, %300 : vector<16x64xf32>
    %310 = arith.index_cast %305 : i32 to index
    %c0_99 = arith.constant 0 : index
    %311 = vector.load %arg19[%310, %c0_99] : memref<128x64xbf16, #tpu.memory_space<vmem>>, vector<16x64xbf16>
    %312 = arith.extf %311 : vector<16x64xbf16> to vector<16x64xf32>
    %313 = arith.addf %309, %312 : vector<16x64xf32>
    %314 = arith.truncf %313 : vector<16x64xf32> to vector<16x64xbf16>
    %315 = arith.index_cast %305 : i32 to index
    %c0_100 = arith.constant 0 : index
    %316 = vector.load %arg19[%315, %c0_100] : memref<128x64xbf16, #tpu.memory_space<vmem>>, vector<16x64xbf16>
    tpu.vector_store %arg19[%315, %c0_100], %314 {strides = array<i32>} : memref<128x64xbf16, #tpu.memory_space<vmem>>, vector<16x64xbf16>,
    %c8_i32 = arith.constant 8 : i32
    %317 = vector.extract_strided_slice %78 {offsets = [0, 0], sizes = [1, 16], strides = [1, 1]} : vector<8x16xf32> to vector<1x16xf32>
    %318 = arith.truncf %317 : vector<1x16xf32> to vector<1x16xbf16>
    %c0_101 = arith.constant 0 : index
    %c0_102 = arith.constant 0 : index
    %319 = vector.load %arg19[%c0_101, %c0_102] : memref<128x64xbf16, #tpu.memory_space<vmem>>, vector<16x64xbf16>
    %cst_103 = arith.constant dense<0.000000e+00> : vector<1x64xf32>
    %320 = tpu.matmul %318, %319, %cst_103 {dimension_numbers = #tpu.dot_dimension_numbers<[1], [0], [0], [1], [0, 0, 1, 1], [], []>} : vector<1x16xbf16>, vector<16x64xbf16>, vector<1x64xf32> -> vector<1x64xf32>
    %321 = vector.extract_strided_slice %78 {offsets = [1, 0], sizes = [1, 16], strides = [1, 1]} : vector<8x16xf32> to vector<1x16xf32>
    %322 = arith.truncf %321 : vector<1x16xf32> to vector<1x16xbf16>
    %c16_104 = arith.constant 16 : index
    %c0_105 = arith.constant 0 : index
    %323 = vector.load %arg19[%c16_104, %c0_105] : memref<128x64xbf16, #tpu.memory_space<vmem>>, vector<16x64xbf16>
    %cst_106 = arith.constant dense<0.000000e+00> : vector<1x64xf32>
    %324 = tpu.matmul %322, %323, %cst_106 {dimension_numbers = #tpu.dot_dimension_numbers<[1], [0], [0], [1], [0, 0, 1, 1], [], []>} : vector<1x16xbf16>, vector<16x64xbf16>, vector<1x64xf32> -> vector<1x64xf32>
    %325 = vector.extract_strided_slice %78 {offsets = [2, 0], sizes = [1, 16], strides = [1, 1]} : vector<8x16xf32> to vector<1x16xf32>
    %326 = arith.truncf %325 : vector<1x16xf32> to vector<1x16xbf16>
    %c32_107 = arith.constant 32 : index
    %c0_108 = arith.constant 0 : index
    %327 = vector.load %arg19[%c32_107, %c0_108] : memref<128x64xbf16, #tpu.memory_space<vmem>>, vector<16x64xbf16>
    %cst_109 = arith.constant dense<0.000000e+00> : vector<1x64xf32>
    %328 = tpu.matmul %326, %327, %cst_109 {dimension_numbers = #tpu.dot_dimension_numbers<[1], [0], [0], [1], [0, 0, 1, 1], [], []>} : vector<1x16xbf16>, vector<16x64xbf16>, vector<1x64xf32> -> vector<1x64xf32>
    %329 = vector.extract_strided_slice %78 {offsets = [3, 0], sizes = [1, 16], strides = [1, 1]} : vector<8x16xf32> to vector<1x16xf32>
    %330 = arith.truncf %329 : vector<1x16xf32> to vector<1x16xbf16>
    %c48_110 = arith.constant 48 : index
    %c0_111 = arith.constant 0 : index
    %331 = vector.load %arg19[%c48_110, %c0_111] : memref<128x64xbf16, #tpu.memory_space<vmem>>, vector<16x64xbf16>
    %cst_112 = arith.constant dense<0.000000e+00> : vector<1x64xf32>
    %332 = tpu.matmul %330, %331, %cst_112 {dimension_numbers = #tpu.dot_dimension_numbers<[1], [0], [0], [1], [0, 0, 1, 1], [], []>} : vector<1x16xbf16>, vector<16x64xbf16>, vector<1x64xf32> -> vector<1x64xf32>
    %333 = vector.extract_strided_slice %78 {offsets = [4, 0], sizes = [1, 16], strides = [1, 1]} : vector<8x16xf32> to vector<1x16xf32>
    %334 = arith.truncf %333 : vector<1x16xf32> to vector<1x16xbf16>
    %c64_113 = arith.constant 64 : index
    %c0_114 = arith.constant 0 : index
    %335 = vector.load %arg19[%c64_113, %c0_114] : memref<128x64xbf16, #tpu.memory_space<vmem>>, vector<16x64xbf16>
    %cst_115 = arith.constant dense<0.000000e+00> : vector<1x64xf32>
    %336 = tpu.matmul %334, %335, %cst_115 {dimension_numbers = #tpu.dot_dimension_numbers<[1], [0], [0], [1], [0, 0, 1, 1], [], []>} : vector<1x16xbf16>, vector<16x64xbf16>, vector<1x64xf32> -> vector<1x64xf32>
    %337 = vector.extract_strided_slice %78 {offsets = [5, 0], sizes = [1, 16], strides = [1, 1]} : vector<8x16xf32> to vector<1x16xf32>
    %338 = arith.truncf %337 : vector<1x16xf32> to vector<1x16xbf16>
    %c80_116 = arith.constant 80 : index
    %c0_117 = arith.constant 0 : index
    %339 = vector.load %arg19[%c80_116, %c0_117] : memref<128x64xbf16, #tpu.memory_space<vmem>>, vector<16x64xbf16>
    %cst_118 = arith.constant dense<0.000000e+00> : vector<1x64xf32>
    %340 = tpu.matmul %338, %339, %cst_118 {dimension_numbers = #tpu.dot_dimension_numbers<[1], [0], [0], [1], [0, 0, 1, 1], [], []>} : vector<1x16xbf16>, vector<16x64xbf16>, vector<1x64xf32> -> vector<1x64xf32>
    %341 = vector.extract_strided_slice %78 {offsets = [6, 0], sizes = [1, 16], strides = [1, 1]} : vector<8x16xf32> to vector<1x16xf32>
    %342 = arith.truncf %341 : vector<1x16xf32> to vector<1x16xbf16>
    %c96_119 = arith.constant 96 : index
    %c0_120 = arith.constant 0 : index
    %343 = vector.load %arg19[%c96_119, %c0_120] : memref<128x64xbf16, #tpu.memory_space<vmem>>, vector<16x64xbf16>
    %cst_121 = arith.constant dense<0.000000e+00> : vector<1x64xf32>
    %344 = tpu.matmul %342, %343, %cst_121 {dimension_numbers = #tpu.dot_dimension_numbers<[1], [0], [0], [1], [0, 0, 1, 1], [], []>} : vector<1x16xbf16>, vector<16x64xbf16>, vector<1x64xf32> -> vector<1x64xf32>
    %345 = vector.extract_strided_slice %78 {offsets = [7, 0], sizes = [1, 16], strides = [1, 1]} : vector<8x16xf32> to vector<1x16xf32>
    %346 = arith.truncf %345 : vector<1x16xf32> to vector<1x16xbf16>
    %c112_122 = arith.constant 112 : index
    %c0_123 = arith.constant 0 : index
    %347 = vector.load %arg19[%c112_122, %c0_123] : memref<128x64xbf16, #tpu.memory_space<vmem>>, vector<16x64xbf16>
    %cst_124 = arith.constant dense<0.000000e+00> : vector<1x64xf32>
    %348 = tpu.matmul %346, %347, %cst_124 {dimension_numbers = #tpu.dot_dimension_numbers<[1], [0], [0], [1], [0, 0, 1, 1], [], []>} : vector<1x16xbf16>, vector<16x64xbf16>, vector<1x64xf32> -> vector<1x64xf32>
    %349 = tpu.concatenate %320, %324, %328, %332, %336, %340, %344, %348 in 0 : vector<1x64xf32>, vector<1x64xf32>, vector<1x64xf32>, vector<1x64xf32>, vector<1x64xf32>, vector<1x64xf32>, vector<1x64xf32>, vector<1x64xf32> -> vector<8x64xf32>
    %c0_125 = arith.constant 0 : index
    %c0_126 = arith.constant 0 : index
    %c0_127 = arith.constant 0 : index
    %350 = vector.load %arg12[%c0_125, %c0_126, %c0_127] : memref<1x1x64xf32, #tpu.memory_space<vmem>>, vector<1x1x64xf32>
    %351 = vector.shape_cast %350 : vector<1x1x64xf32> to vector<1x64xf32>
    %352 = vector.broadcast %351 : vector<1x64xf32> to vector<8x64xf32>
    %353 = arith.mulf %71, %352 : vector<8x64xf32>
    %354 = arith.addf %349, %353 : vector<8x64xf32>
    %355 = arith.negf %35 : vector<8x64xf32>
    %356 = math.exp %355 : vector<8x64xf32>
    %cst_128 = arith.constant 1.000000e+00 : f32
    %357 = vector.broadcast %cst_128 : f32 to vector<8x64xf32>
    %358 = arith.addf %357, %356 : vector<8x64xf32>
    %359 = arith.divf %357, %358 : vector<8x64xf32>
    %360 = arith.mulf %35, %359 : vector<8x64xf32>
    %361 = arith.mulf %354, %360 : vector<8x64xf32>
    %c0_129 = arith.constant 0 : index
    %c0_130 = arith.constant 0 : index
    %c0_131 = arith.constant 0 : index
    %362 = vector.load %arg13[%c0_129, %c0_130, %c0_131] : memref<1x64x32xbf16, #tpu.memory_space<vmem>>, vector<1x64x32xbf16>
    %363 = vector.shape_cast %362 : vector<1x64x32xbf16> to vector<64x32xbf16>
    %364 = arith.truncf %361 : vector<8x64xf32> to vector<8x64xbf16>
    %cst_132 = arith.constant dense<0.000000e+00> : vector<8x32xf32>
    %365 = tpu.matmul %364, %363, %cst_132 {dimension_numbers = #tpu.dot_dimension_numbers<[1], [0], [0], [1], [0, 0, 1, 1], [], []>} : vector<8x64xbf16>, vector<64x32xbf16>, vector<8x32xf32> -> vector<8x32xf32>
    %366 = arith.addf %3, %365 : vector<8x32xf32>
    %c0_133 = arith.constant 0 : index
    %c0_134 = arith.constant 0 : index
    %367 = vector.load %arg17[%c0_133, %c0_134] : memref<8x32xf32, #tpu.memory_space<vmem>>, vector<8x32xf32>
    tpu.vector_store %arg17[%c0_133, %c0_134], %366 {strides = array<i32>} : memref<8x32xf32, #tpu.memory_space<vmem>>, vector<8x32xf32>,
    %c1_i32_135 = arith.constant 1 : i32
    %368 = arith.cmpi eq, %arg1, %c1_i32_135 : i32
    %369 = arith.extui %368 : i1 to i32
    %c0_i32_136 = arith.constant 0 : i32
    %370 = arith.cmpi ne, %369, %c0_i32_136 : i32
    scf.if %370 {
      %c0_137 = arith.constant 0 : index
      %c0_138 = arith.constant 0 : index
      %371 = vector.load %arg14[%c0_137, %c0_138] : memref<1x32xf32, #tpu.memory_space<vmem>>, vector<1x32xf32>
      %c0_139 = arith.constant 0 : index
      %c0_140 = arith.constant 0 : index
      %372 = vector.load %arg15[%c0_139, %c0_140] : memref<1x32xf32, #tpu.memory_space<vmem>>, vector<1x32xf32>
      %cst_141 = arith.constant dense<0.000000e+00> : vector<8xf32>
      %373 = vector.multi_reduction <add>, %366, %cst_141 [1] : vector<8x32xf32> to vector<8xf32>
      %374 = vector.shape_cast %373 : vector<8xf32> to vector<8x1xf32>
      %cst_142 = arith.constant 3.200000e+01 : f32
      %375 = vector.broadcast %cst_142 : f32 to vector<8x1xf32>
      %376 = arith.divf %374, %375 : vector<8x1xf32>
      %377 = vector.broadcast %376 : vector<8x1xf32> to vector<8x32xf32>
      %378 = arith.subf %366, %377 : vector<8x32xf32>
      %379 = arith.mulf %378, %378 : vector<8x32xf32>
      %cst_143 = arith.constant dense<0.000000e+00> : vector<8xf32>
      %380 = vector.multi_reduction <add>, %379, %cst_143 [1] : vector<8x32xf32> to vector<8xf32>
      %381 = vector.shape_cast %380 : vector<8xf32> to vector<8x1xf32>
      %cst_144 = arith.constant 3.200000e+01 : f32
      %382 = vector.broadcast %cst_144 : f32 to vector<8x1xf32>
      %383 = arith.divf %381, %382 : vector<8x1xf32>
      %384 = vector.broadcast %376 : vector<8x1xf32> to vector<8x32xf32>
      %385 = arith.subf %366, %384 : vector<8x32xf32>
      %cst_145 = arith.constant 9.99999974E-6 : f32
      %386 = vector.broadcast %cst_145 : f32 to vector<8x1xf32>
      %387 = arith.addf %383, %386 : vector<8x1xf32>
      %388 = math.rsqrt %387 : vector<8x1xf32>
      %389 = vector.broadcast %388 : vector<8x1xf32> to vector<8x32xf32>
      %390 = arith.mulf %385, %389 : vector<8x32xf32>
      %391 = vector.broadcast %371 : vector<1x32xf32> to vector<8x32xf32>
      %392 = arith.mulf %390, %391 : vector<8x32xf32>
      %393 = vector.broadcast %372 : vector<1x32xf32> to vector<8x32xf32>
      %394 = arith.addf %392, %393 : vector<8x32xf32>
      %c0_146 = arith.constant 0 : index
      %c0_147 = arith.constant 0 : index
      %c0_148 = arith.constant 0 : index
      %395 = vector.load %arg16[%c0_146, %c0_147, %c0_148] : memref<1x8x32xf32, #tpu.memory_space<vmem>>, vector<1x8x32xf32>
      %396 = vector.shape_cast %395 : vector<1x8x32xf32> to vector<8x32xf32>
      %397 = vector.shape_cast %394 : vector<8x32xf32> to vector<1x8x32xf32>
      tpu.vector_store %arg16[%c0_146, %c0_147, %c0_148], %397 {strides = array<i32>} : memref<1x8x32xf32, #tpu.memory_space<vmem>>, vector<1x8x32xf32>,
    } else {
    }
    return
  }
  func.func @transform_0(%arg0: i32, %arg1: i32) -> (i32, i32, i32) {
    %c0_i32 = arith.constant 0 : i32
    %c0_i32_0 = arith.constant 0 : i32
    %c0_i32_1 = arith.constant 0 : i32
    return %arg0, %c0_i32, %c0_i32_0 : i32, i32, i32
  }
  func.func @transform_1(%arg0: i32, %arg1: i32) -> (i32, i32, i32) {
    %c0_i32 = arith.constant 0 : i32
    %c0_i32_0 = arith.constant 0 : i32
    %c0_i32_1 = arith.constant 0 : i32
    return %arg1, %c0_i32, %c0_i32_0 : i32, i32, i32
  }
  func.func @transform_2(%arg0: i32, %arg1: i32) -> (i32, i32, i32) {
    %c0_i32 = arith.constant 0 : i32
    %c0_i32_0 = arith.constant 0 : i32
    %c0_i32_1 = arith.constant 0 : i32
    return %arg1, %c0_i32, %c0_i32_0 : i32, i32, i32
  }
  func.func @transform_3(%arg0: i32, %arg1: i32) -> (i32, i32, i32) {
    %c0_i32 = arith.constant 0 : i32
    %c0_i32_0 = arith.constant 0 : i32
    %c0_i32_1 = arith.constant 0 : i32
    return %arg1, %c0_i32, %c0_i32_0 : i32, i32, i32
  }
  func.func @transform_4(%arg0: i32, %arg1: i32) -> (i32, i32, i32) {
    %c0_i32 = arith.constant 0 : i32
    %c0_i32_0 = arith.constant 0 : i32
    %c0_i32_1 = arith.constant 0 : i32
    return %arg1, %c0_i32, %c0_i32_0 : i32, i32, i32
  }
  func.func @transform_5(%arg0: i32, %arg1: i32) -> (i32, i32, i32) {
    %c0_i32 = arith.constant 0 : i32
    %c0_i32_0 = arith.constant 0 : i32
    %c0_i32_1 = arith.constant 0 : i32
    return %arg1, %c0_i32, %c0_i32_0 : i32, i32, i32
  }
  func.func @transform_6(%arg0: i32, %arg1: i32) -> (i32, i32, i32) {
    %c0_i32 = arith.constant 0 : i32
    %c0_i32_0 = arith.constant 0 : i32
    %c0_i32_1 = arith.constant 0 : i32
    return %arg1, %c0_i32, %c0_i32_0 : i32, i32, i32
  }
  func.func @transform_7(%arg0: i32, %arg1: i32) -> (i32, i32, i32) {
    %c0_i32 = arith.constant 0 : i32
    %c0_i32_0 = arith.constant 0 : i32
    %c0_i32_1 = arith.constant 0 : i32
    return %arg1, %c0_i32, %c0_i32_0 : i32, i32, i32
  }
  func.func @transform_8(%arg0: i32, %arg1: i32) -> (i32, i32, i32) {
    %c0_i32 = arith.constant 0 : i32
    %c0_i32_0 = arith.constant 0 : i32
    %c0_i32_1 = arith.constant 0 : i32
    return %arg1, %c0_i32, %c0_i32_0 : i32, i32, i32
  }
  func.func @transform_9(%arg0: i32, %arg1: i32) -> (i32, i32, i32) {
    %c0_i32 = arith.constant 0 : i32
    %c0_i32_0 = arith.constant 0 : i32
    %c0_i32_1 = arith.constant 0 : i32
    return %arg1, %c0_i32, %c0_i32_0 : i32, i32, i32
  }
  func.func @transform_10(%arg0: i32, %arg1: i32) -> (i32, i32, i32) {
    %c0_i32 = arith.constant 0 : i32
    %c0_i32_0 = arith.constant 0 : i32
    %c0_i32_1 = arith.constant 0 : i32
    return %arg1, %c0_i32, %c0_i32_0 : i32, i32, i32
  }
  func.func @transform_11(%arg0: i32, %arg1: i32) -> (i32, i32, i32) {
    %c0_i32 = arith.constant 0 : i32
    %c0_i32_0 = arith.constant 0 : i32
    %c0_i32_1 = arith.constant 0 : i32
    return %arg1, %c0_i32, %c0_i32_0 : i32, i32, i32
  }
  func.func @transform_12(%arg0: i32, %arg1: i32) -> (i32, i32) {
    %c0_i32 = arith.constant 0 : i32
    %c0_i32_0 = arith.constant 0 : i32
    %c0_i32_1 = arith.constant 0 : i32
    return %c0_i32, %c0_i32_0 : i32, i32
  }
  func.func @transform_13(%arg0: i32, %arg1: i32) -> (i32, i32) {
    %c0_i32 = arith.constant 0 : i32
    %c0_i32_0 = arith.constant 0 : i32
    %c0_i32_1 = arith.constant 0 : i32
    return %c0_i32, %c0_i32_0 : i32, i32
  }
  func.func @transform_14(%arg0: i32, %arg1: i32) -> (i32, i32, i32) {
    %c0_i32 = arith.constant 0 : i32
    %c0_i32_0 = arith.constant 0 : i32
    %c0_i32_1 = arith.constant 0 : i32
    return %arg0, %c0_i32, %c0_i32_0 : i32, i32, i32
  }
}

</mosaic_0001>

<bundles_post_ra>
// kernel: mamba_encoder_forward.1
= control target key start
LH: loop header
LB: loop body
LE: loop exit
PB: predicated region body
PF: predicated region fallthrough
CT: control target
= control target key end

     0   :  { %s2777_s0 = inlined_call_operand.vmem [shape: f32[2,8,32], index: 0, kind: input, shape index: {}]   ;;  %s2778_s1 = inlined_call_operand.vmem [shape: f32[2,1,32], index: 1, kind: input, shape index: {}]   ;;  %s2779_s2 = inlined_call_operand.vmem [shape: f32[2,1,32], index: 2, kind: input, shape index: {}]   ;;  %s2780_s3 = inlined_call_operand.vmem [shape: bf16[2,32,128], index: 3, kind: input, shape index: {}]   ;;  %s2781_s4 = inlined_call_operand.vmem [shape: f32[2,4,64], index: 4, kind: input, shape index: {}]   ;;  %s2782_s5 = inlined_call_operand.vmem [shape: f32[2,1,64], index: 5, kind: input, shape index: {}]   ;;  %s2783_s6 = inlined_call_operand.vmem [shape: bf16[2,64,40], index: 6, kind: input, shape index: {}]   ;;  %s2784_s7 = inlined_call_operand.vmem [shape: bf16[2,8,64], index: 7, kind: input, shape index: {}]   ;;  %s2785_s8 = inlined_call_operand.vmem [shape: f32[2,1,64], index: 8, kind: input, shape index: {}]   ;;  %s2786_s9 = inlined_call_operand.vmem [shape: f32[2,16,64], index: 9, kind: input, shape index: {}]   ;;  %s2787_s10 = inlined_call_operand.vmem [shape: f32[2,1,64], index: 10, kind: input, shape index: {}]   ;;  %s2788_s11 = inlined_call_operand.vmem [shape: bf16[2,64,32], index: 11, kind: input, shape index: {}]   ;;  %s2789_s12 = inlined_call_operand.vmem [shape: f32[1,32], index: 12, kind: input, shape index: {}]   ;;  %s2790_s13 = inlined_call_operand.vmem [shape: f32[1,32], index: 13, kind: input, shape index: {}]   ;;  %s2791_s14 = inlined_call_operand.hbm [shape: f32[2,8,32], index: 14, kind: output, shape index: {}]  }
   0x1   :  { %2807 = sst [smem:[#allocation21_spill]] %s2777_s0 }
   0x2   :  { %2808 = sst [smem:[#allocation22_spill]] %s2780_s3 }
   0x3   :  { %2809 = sst [smem:[#allocation23_spill]] %s2781_s4 }
   0x4   :  { %2810 = sst [smem:[#allocation24_spill]] %s2784_s7 }
   0x5   :  { %2811 = sst [smem:[#allocation25_spill]] %s2789_s12 }
   0x6   :  { %2812 = sst [smem:[#allocation26_spill]] %s2790_s13 }
   0x7   :  { %2813 = sst [smem:[#allocation27_spill]] %s2791_s14 }
   0x8   :  { %19 = vsyncpa [#allocation6], 0 }
   0x9   :  { %21 = vsyncpa [#allocation6 + $0x1], 0  ;;  %s2395_s29 = smov 0   ;;  %s2397_s30 = smov 0  }
   0xa   :  { %s2399_s15 = smov 0   ;;  %s2401_s16 = smov 0  }
   0xb   :  { %s2403_s17 = smov 0   ;;  %s2405_s18 = smov 0  }
   0xc   :  { %s2407_s19 = smov 0   ;;  %s2409_s20 = smov 0  }
   0xd LB: > { %2814 = sst [smem:[#allocation8_spill]] %s2278_s29  ;;  %s1855_s21 = sadd.s32 4294967295, %s2306_s20   ;;  %s2306_s20 = sphi %s2409_s20, %s27_s20   ;;  %s2302_s19 = sphi %s2407_s19, %s2854_s19   ;;  %s2298_s18 = sphi %s2405_s18, %s2853_s18   ;;  %s2294_s17 = sphi %s2403_s17, %s2852_s17   ;;  %s2290_s16 = sphi %s2401_s16, %s2851_s16   ;;  %s2286_s15 = sphi %s2399_s15, %s2850_s15   ;;  %s2282_s30 = sphi %s2397_s30, %s2849_s30   ;;  %s2278_s29 = sphi %s2395_s29, %s2848_s29  }
   0xe   : > { %2815 = sst [smem:[#allocation9_spill]] %s2282_s30  ;;  %s1856_s22 = sadd.s32 4294967294, %s2306_s20  }
   0xf   : > { %2816 = sst [smem:[#allocation10_spill]] %s2286_s15  ;;  %s36_s23 = sadd.s32 1, %s2298_s18 }
  0x10   : > { %2817 = sst [smem:[#allocation11_spill]] %s2290_s16  ;;  %p37_p0 = scmp.ge.s32.totalorder %s36_s23, 2 }
  0x11   : > { %2818 = sst [smem:[#allocation12_spill]] %s2294_s17  ;;  %s39_s24 = sadd.s32 1, %s2302_s19 }
  0x12   : > { %2819 = sst [smem:[#allocation13_spill]] %s2298_s18  ;;  %p410_p1 = scmp.ne.s32.totalorder %s2286_s15, %s2282_s30 }
  0x13   : > { %2820 = sst [smem:[#allocation14_spill]] %s2302_s19  ;;  %p411_p2 = scmp.eq.s32.totalorder %s1855_s21, 3 }
  0x14   : > { %2821 = sst [smem:[#allocation15_spill]] %s2306_s20  ;;  %s2856_s23 = smov (%p37_p0, %s36_s23), 0 }
  0x15   : > { %2822 = sst [smem:[#allocation16_spill]] %s2856_s23  ;;  %s2858_s24 = smov (!%p37_p0, %s39_s24), %s2302_s19 }
  0x16   : > { %p2444_p3 = por %p411_p2, %p410_p1  ;;  %p416_p4 = scmp.ne.s32.totalorder %s2282_s30, %s2278_s29 }
  0x17   : > { %p41_p5 = scmp.ge.s32.totalorder %s2858_s24, 2  ;;  %p417_p6 = scmp.eq.s32.totalorder %s1856_s22, 3 }
  0x18   : > { %s2823_s25 = scalar_select %p2444_p3, 1, 0 }
  0x19   : > { %p1859_p7 = scmp.ge.s32.totalorder %s2306_s20, 1  ;;  %p524_p8 = scmp.lt.s32.totalorder %s2306_s20, 5 }
  0x1a   : > { %2824 = sst [smem:[#allocation17_spill]] %s2823_s25  ;;  %s2860_s24 = smov (%p41_p5, %s2858_s24), 0 }
  0x1b   : > { %2825 = sst [smem:[#allocation18_spill]] %s2860_s24  ;;  %p2454_p9 = por %p417_p6, %p416_p4 }
  0x1c   : > { %p525_p10 = pnand %p1859_p7, %p524_p8  ;;  %s397_s27 = ssub.s32 %s2302_s19, %s2860_s24 }
  0x1d   : > { %s2826_s26 = scalar_select %p2454_p9, 1, 0 }
  0x1e   : > { %s400_s28 = sadd.s32 1, %s2286_s15  ;;  %p398_p11 = scmp.eq.s32.totalorder %s397_s27, 0 }
  0x1f   : > { %2827 = sst [smem:[#allocation19_spill]] %s2826_s26  ;;  %528 = sbr.rel (%p525_p10) target bundleno = 1695 (0x69f), region = 76 }
  0x20   : > { %s2462_s21 = scalar_select %p398_p11, %s2286_s15, %s400_s28  }
  0x21   : > { %s2796_s22 = sand.u32 (!%p525_p10), 1, %s2282_s30   ;;  %p612_p12 = scmp.lt.s32.totalorder (!%p525_p10), %s2294_s17, 1 }
  0x22   : > { %2828 = sst [smem:[#allocation20_spill]] %s2462_s21  ;;  %s2468_s23 = sshll.u32 (!%p525_p10), %s2796_s22, 3 }
  0x23   : > { %p616_p13 = scmp.lt.s32.totalorder (!%p525_p10), %s2290_s16, 1  ;;  %s2829_s0 = sld [smem:[#allocation21_spill]] (!%p525_p10) }
  0x24   : > { %s613_s18 = scalar_select %p612_p12, %s2294_s17, 1 }
  0x25   : > { %s2473_s26 = scalar_select %p616_p13, %s2290_s16, 1 }
  0x26   : > { %s1861_s27 = sshll.u32 %s613_s18, 3  ;;  %s2830_s3 = sld [smem:[#allocation22_spill]] }
  0x27   : > { %s1964_s25 = sshll.u32 %s2473_s26, 4  ;;  %s1864_s18 = sshll.u32 %s2473_s26, 2 }
  0x28   : > { %s2831_s4 = sld [smem:[#allocation23_spill]]  ;;  %s1965_s22 = sshll.u32 %s2473_s26, 5 }
  0x29   : > { %s615_s19 = scalar_lea.vmem %s2829_s0, %s1861_s27  ;;  %s2832_s7 = sld [smem:[#allocation24_spill]] }
  0x2a   : > { %s2511_s17 = scalar_lea.vmem %s2783_s6, %s1965_s22  ;;  %s645_s12 = scalar_lea.vmem %s2785_s8, %s2473_s26 }
  0x2b   : > { %s2520_s27 = scalar_lea.vmem %s2786_s9, %s1964_s25  ;;  %s653_s15 = scalar_lea.vmem %s2787_s10, %s2473_s26 }
  0x2c   : > { %s2490_s13 = scalar_lea.vmem %s2830_s3, %s1964_s25  ;;  %s611_s14 = scalar_lea.vmem [#allocation5], %s2468_s23 }
  0x2d   : > { %s2833_s30 = sld [smem:[#allocation11_spill]] }
  0x2e   : > { %s2496_s24 = scalar_lea.vmem %s2831_s4, %s1864_s18 }
  0x2f   : > { %s2506_s20 = scalar_lea.vmem %s2832_s7, %s1864_s18  ;;  %s2529_s7 = scalar_lea.vmem %s2788_s11, %s1965_s22 }
  0x33   : > { %p1872_p0 = scmp.ne.s32.totalorder %s2833_s30, 0 }
  0x35   : > { %663 = sbr.rel (%p1872_p0) target bundleno = 60 (0x3c), region = 80 }
  0x3a   : > { %v664_v0 = vld [vmem:[%s615_s19] sm:$0xff]  ;;  %vm665_vm0 = vcmask 261120  }
  0x3b   : > { %666 = vst.msk [vmem:[#allocation2] sm:$0xff] %vm665_vm0, %v664_v0 }
  0x3c PF: > { %vm670_vm1 = vcmask 261120   ;;  %v2308_v3 = vmov 32.0   ;;  %v1969_v15 = vld [vmem:[%s2490_s13 + $0x8] sm:$0xff]  ;;  %v1968_v16 = vld [vmem:[%s2490_s13] sm:$0xff]  ;;  %s2834_s4 = scalar_lea.vmem %s2778_s1, %s2473_s26  ;;  %s2835_s25 = scalar_lea.vmem %s2779_s2, %s2473_s26  ;;  %v1973_v33 = vld [vmem:[%s2511_s17 + $0x18] sm:$0xff]  ;;  %vm747_vm6 = vcmask 1040384  }
  0x3d   : > { %2155 = vrcp.f32 %v2308_v3  ;;  %734 = vmatpush.bf16.msra.mxu0 %v1969_v15  ;;  %v2150_v26 = vld [vmem:[%s2834_s4] ss:$0 sm:$0xff]  ;;  %832 = vmatpush.bf16.msra.mxu1 %v1973_v33  ;;  %v1972_v34 = vld [vmem:[%s2511_s17 + $0x10] sm:$0xff]  ;;  %v1971_v35 = vld [vmem:[%s2511_s17 + $0x8] sm:$0xff]  ;;  %vm754_vm7 = vcmask 1041408   ;;  %vm761_vm8 = vcmask 1042432   ;;  %s2836_s22 = scalar_lea.vmem %s2782_s5, %s2473_s26 }
  0x3e   : > { %v2151_v29 = vld [vmem:[%s2835_s25] ss:$0 sm:$0xff]  ;;  %vm824_vm13 = vcmask 523264   ;;  %vm851_vm14 = vcmask 1043456   ;;  %vm847_vm15 = vcmask 64512   ;;  %s2837_s26 = sld [smem:[#allocation11_spill]] }
  0x3f   : > { %v1970_v36 = vld [vmem:[%s2511_s17] sm:$0xff]  ;;  %s2309_s17 = smov 120  }
  0x40   : > { %v741_v37 = vld [vmem:[%s2496_s24] sm:$0xf] }
  0x41   : > { %735 = vmatpush.bf16.msra.mxu0 %v1968_v16  ;;  %833 = vmatpush.bf16.msra.mxu1 %v1972_v34  ;;  %v742_v39 = vperm.slane %v741_v37, 3  ;;  %v749_v40 = vperm.slane %v741_v37, 2  ;;  %v756_v44 = vperm.slane %v741_v37, 1  ;;  %v763_v49 = vperm.slane %v741_v37, 0  ;;  %v2152_v56 = vld [vmem:[%s2836_s22] ss:$0 sm:$0xff] }
  0x42   : > { %v667_v1 = vld [vmem:[#allocation2] sm:$0xff] }
  0x43   : > { %v671_v2 = vsel %vm670_vm1, %v667_v1, 0.0  ;;  %v2156_v4 = vpop.eup %2155 }
  0x44   : > { %672 = vadd.xlane.f32.xlu0 %v671_v2  ;;  %v675_v5 = vmul.f32 32.0, %v2156_v4  ;;  %vm679_vm2 = vweird.f32 %v2156_v4  ;;  %p1959_p1 = scmp.ne.s32.totalorder %s2837_s26, 1 }
  0x45   : > { %834 = vmatpush.bf16.msra.mxu1 %v1971_v35  ;;  %s2838_s29 = sld [smem:[#allocation25_spill]] (!%p1959_p1) }
  0x46   : > { %v676_v6 = vsub.f32 1.0, %v675_v5  ;;  %s2839_s3 = sld [smem:[#allocation26_spill]] (!%p1959_p1) }
  0x48   : > { %v677_v7 = vmul.f32 %v2156_v4, %v676_v6 }
  0x49   : > { %835 = vmatpush.bf16.msra.mxu1 %v1970_v36 }
  0x4a   : > { %v678_v8 = vadd.f32 %v2156_v4, %v677_v7 }
  0x4c   : > { %v2534_v9 = vsel %vm679_vm2, %v2156_v4, %v678_v8 }
  0xb7   : > { %v673_v10 = vpop.xlane.xlu0 %672 }
  0xb8   : > { %v681_v11 = vmul.f32 %v2534_v9, %v673_v10 }
  0xba   : > { %v682_v12 = vsub.f32 %v667_v1, %v681_v11  ;;  %v841_v11 = vld [vmem:[%s2506_s20] sm:$0xf]  ;;  %s2315_s20 = smov 104  }
  0xbc   : > { %v683_v13 = vmul.f32 %v682_v12, %v682_v12 }
  0xbe   : > { %v684_v14 = vsel %vm670_vm1, %v683_v13, 0.0 }
  0xbf   : > { %685 = vadd.xlane.f32.xlu0 %v684_v14 }
 0x132   : > { %v686_v17 = vpop.xlane.xlu0 %685 }
 0x133   : > { %v687_v18 = vmul.f32 %v686_v17, %v2534_v9  ;;  %v2153_v17 = vld [vmem:[%s645_s12] ss:$0 sm:$0xff]  ;;  %s2319_s12 = smov 64  }
 0x135   : > { %v688_v19 = vadd.f32 1e-05, %v687_v18 }
 0x137   : > { %2157 = vrsqrt.f32 %v688_v19  ;;  %vm695_vm4 = vweird.f32 %v688_v19 }
 0x13d   : > { %v2158_v20 = vpop.eup %2157 }
 0x13e   : > { %v690_v21 = vmul.f32 %v2158_v20, %v688_v19  ;;  %vm696_vm3 = vweird.f32 %v2158_v20 }
 0x13f   : > { %vm697_vm5 = vmor %vm695_vm4, %vm696_vm3  ;;  %vm940_vm3 = vcmask 519168  }
 0x140   : > { %v691_v22 = vmul.f32 %v2158_v20, %v690_v21 }
 0x142   : > { %v692_v23 = vmul.f32 0.5, %v691_v22 }
 0x144   : > { %v693_v24 = vsub.f32 1.5, %v692_v23 }
 0x146   : > { %v694_v25 = vmul.f32 %v2158_v20, %v693_v24  ;;  %v886_v24 = vld [vmem:[%s2520_s27] sm:$0xff] }
 0x148   : > { %v698_v27 = vsel %vm697_vm5, %v2158_v20, %v694_v25  ;;  %v887_v25 = vld [vmem:[%s2520_s27 + $0x8] sm:$0xff] }
 0x149   : > { %v699_v28 = vmul.f32 %v698_v27, %v682_v12  ;;  %v853_v12 = vsel %vm851_vm14, %v841_v11, 0  ;;  %v888_v27 = vmul.f32 1.442695, %v886_v24 }
 0x14a   : > { %862 = vmatpush.bf16.msra.mxu2 %v853_v12 }
 0x14b   : > { %v703_v30 = vmul.f32 %v2150_v26, %v699_v28 }
 0x14d   : > { %v707_v31 = vadd.f32 %v2151_v29, %v703_v30  ;;  %v890_v29 = vmul.f32 1.442695, %v887_v25 }
 0x14f   : > { %v712_v32 = vpack.c.bf16 %v707_v31, %v707_v31 }
 0x151   : > { %1881 = vmatmul.msk.bf16.vlgmr.msra.gmra.mxu0 %vm670_vm1, %v712_v32 }
 0x1ce   : > { %v2557_v38 = vpop.f32.mrf.mxu0 }
 0x1cf   : > { %v745_v41 = vrot.slane %v2557_v38, 7  ;;  %v752_v42 = vrot.slane %v2557_v38, 6  ;;  %v759_v43 = vrot.slane %v2557_v38, 5  ;;  %v743_v47 = vmul.f32 %v742_v39, %v2557_v38 }
 0x1d1   : > { %v748_v45 = vsel %vm747_vm6, 0.0, %v745_v41  ;;  %v755_v46 = vsel %vm754_vm7, 0.0, %v752_v42  ;;  %v762_v50 = vsel %vm761_vm8, 0.0, %v759_v43 }
 0x1d2   : > { %v750_v48 = vmul.f32 %v749_v40, %v748_v45  ;;  %v757_v52 = vmul.f32 %v756_v44, %v755_v46  ;;  %v764_v55 = vmul.f32 %v763_v49, %v762_v50  ;;  %v2310_v45 = vmov 1  }
 0x1d3   : > { %2135 = vset.pattern.permute.xlu0 %v2310_v45  ;;  %v2311_v46 = vmov 0  }
 0x1d4   : > { %v751_v51 = vadd.f32 %v750_v48, %v743_v47  ;;  %2134 = vset.pattern.permute.xlu2 %v2311_v46 }
 0x1d6   : > { %v739_v53 = vpop.f32.mrf.mxu0  ;;  %v758_v54 = vadd.f32 %v757_v52, %v751_v51 }
 0x1d8   : > { %v765_v57 = vadd.f32 %v764_v55, %v758_v54 }
 0x1da   : > { %v770_v58 = vadd.f32 %v2152_v56, %v765_v57 }
 0x1dc   : > { %v1882_v59 = vmul.f32 -1.442695, %v770_v58 }
 0x1de   : > { %2159 = vpow2.f32 %v1882_v59 }
 0x1e4   : > { %v2160_v60 = vpop.eup %2159 }
 0x1e5   : > { %v774_v61 = vadd.f32 1.0, %v2160_v60 }
 0x1e7   : > { %2161 = vrcp.f32 %v774_v61  ;;  %v786_v1 = vand.u32 2147483648, %v774_v61  ;;  %v784_v3 = vand.u32 2147483647, %v774_v61  ;;  %vm780_vm10 = vweird.f32 %v774_v61 }
 0x1e9   : > { %v787_v5 = vor.u32 1.1754944e-38, %v786_v1  ;;  %vm785_vm12 = vcmp.eq.f32.partialorder %v784_v3, 8.507059e+37 }
 0x1ed   : > { %v2162_v62 = vpop.eup %2161 }
 0x1ee   : > { %v776_v63 = vmul.f32 %v2162_v62, %v774_v61  ;;  %vm781_vm9 = vweird.f32 %v2162_v62 }
 0x1ef   : > { %vm782_vm11 = vmor %vm780_vm10, %vm781_vm9 }
 0x1f0   : > { %v777_v0 = vsub.f32 1.0, %v776_v63 }
 0x1f2   : > { %v778_v2 = vmul.f32 %v2162_v62, %v777_v0 }
 0x1f4   : > { %v779_v4 = vadd.f32 %v2162_v62, %v778_v2 }
 0x1f6   : > { %v783_v6 = vsel %vm782_vm11, %v2162_v62, %v779_v4  ;;  %vm1295_vm11 = vcmask 130048  }
 0x1f7   : > { %v788_v7 = vsel %vm785_vm12, %v787_v5, %v783_v6  ;;  %vm1527_vm12 = vcmask 1044480  }
 0x1f8   : > { %v2571_v8 = vmul.f32 %v788_v7, %v770_v58 }
 0x1fa   : > { %v799_v10 = vpack.c.bf16 %v2571_v8, %v2571_v8 }
 0x1fc   : > { %1899 = vmatmul.msk.bf16.vlgmr.msra.gmra.mxu1 %vm824_vm13, %v799_v10 }
 0x279   : > { %v837_v13 = vpop.f32.mrf.mxu1 }
 0x27a   : > { %v2578_v14 = vpack.c.bf16 %v837_v13, %v837_v13  ;;  %896 = vrot.lane.b32.xlu1 %v837_v13, %s2309_s17 }
 0x27c   : > { %1900 = vmatmul.msk.bf16.vlgmr.msra.gmra.mxu2 %vm847_vm15, %v2578_v14  ;;  %vm1529_vm15 = vcmask 1045504  }
 0x281   : > { %v839_v15 = vpop.f32.mrf.mxu1 }
 0x2ec   : > { %v897_v16 = vpop.permute.xlu1 %896 }
 0x2ed   : > { %899 = vxpose.xlu1.b32.start.end [1/1] (short) (narrow) %v897_v16, 16 }
 0x2ff   : > { %v864_v18 = vpop.f32.mrf.mxu2 }
 0x300   : > { %v865_v19 = vadd.f32 %v2153_v17, %v864_v18 }
 0x302   : > { %v871_v20 = vand.u32 2147483647, %v865_v19  ;;  %v868_v39 = vmax.f32 %v865_v19, 0.0  ;;  %vm869_vm2 = vcmp.ne.f32.partialorder %v865_v19, %v865_v19 }
 0x304   : > { %v872_v21 = vsub.f32 0.0, %v871_v20 }
 0x306   : > { %v873_v22 = vmul.f32 1.442695, %v872_v21 }
 0x307   : > { %v866_v23 = vpop.f32.mrf.mxu2 }
 0x308   : > { %2163 = vpow2.f32 %v873_v22 }
 0x30e   : > { %v2164_v26 = vpop.eup %2163 }
 0x30f   : > { %v875_v28 = vadd.f32 1.0, %v2164_v26  ;;  %v878_v30 = vmul.f32 -0.5, %v2164_v26  ;;  %v881_v32 = vand.u32 2147483647, %v2164_v26 }
 0x311   : > { %2165 = vlog2.f32 %v875_v28  ;;  %v879_v31 = vadd.f32 1.0, %v878_v30  ;;  %vm882_vm0 = vcmp.lt.f32.partialorder %v881_v32, 0.0004427343 }
 0x312   : > { %2167 = vpow2.f32 %v888_v27 }
 0x313   : > { %2169 = vpow2.f32 %v890_v29  ;;  %v880_v36 = vmul.f32 %v2164_v26, %v879_v31 }
 0x317   : > { %v2166_v33 = vpop.eup %2165 }
 0x318   : > { %v2168_v34 = vpop.eup %2167  ;;  %v877_v35 = vmul.f32 0.6931472, %v2166_v33 }
 0x319   : > { %v2170_v37 = vpop.eup %2169  ;;  %v892_v42 = vsub.f32 0.0, %v2168_v34 }
 0x31a   : > { %v883_v40 = vsel %vm882_vm0, %v880_v36, %v877_v35  ;;  %v893_v43 = vsub.f32 0.0, %v2170_v37 }
 0x31b   : > { %v884_v41 = vadd.f32 %v883_v40, %v868_v39 }
 0x31d   : > { %v2588_v44 = vsel %vm869_vm2, %v865_v19, %v884_v41 }
 0x31e   : > { %v931_v47 = vperm.slane %v2588_v44, 0  ;;  %v960_v48 = vperm.slane %v2588_v44, 1  ;;  %v986_v49 = vperm.slane %v2588_v44, 2  ;;  %v1012_v50 = vperm.slane %v2588_v44, 3 }
 0x31f   : > { %v1038_v51 = vperm.slane %v2588_v44, 4  ;;  %v1064_v58 = vperm.slane %v2588_v44, 5  ;;  %v1090_v3 = vperm.slane %v2588_v44, 6  ;;  %v1116_v10 = vperm.slane %v2588_v44, 7 }
 0x320   : > { %v932_v52 = vmul.f32 %v931_v47, %v892_v42  ;;  %v933_v53 = vmul.f32 %v931_v47, %v893_v43  ;;  %v961_v54 = vmul.f32 %v960_v48, %v892_v42  ;;  %v962_v55 = vmul.f32 %v960_v48, %v893_v43 }
 0x321   : > { %v987_v56 = vmul.f32 %v986_v49, %v892_v42  ;;  %v988_v57 = vmul.f32 %v986_v49, %v893_v43  ;;  %v1013_v62 = vmul.f32 %v1012_v50, %v892_v42  ;;  %v1014_v0 = vmul.f32 %v1012_v50, %v893_v43 }
 0x322   : > { %v934_v59 = vmul.f32 1.442695, %v932_v52  ;;  %v936_v60 = vmul.f32 1.442695, %v933_v53  ;;  %v963_v61 = vmul.f32 1.442695, %v961_v54  ;;  %v1039_v2 = vmul.f32 %v1038_v51, %v892_v42 }
 0x323   : > { %v965_v63 = vmul.f32 1.442695, %v962_v55  ;;  %v989_v1 = vmul.f32 1.442695, %v987_v56  ;;  %v991_v4 = vmul.f32 1.442695, %v988_v57  ;;  %v1040_v5 = vmul.f32 %v1038_v51, %v893_v43 }
 0x324   : > { %2171 = vpow2.f32 %v934_v59  ;;  %v1015_v6 = vmul.f32 1.442695, %v1013_v62  ;;  %v1065_v7 = vmul.f32 %v1064_v58, %v892_v42  ;;  %v1017_v11 = vmul.f32 1.442695, %v1014_v0 }
 0x325   : > { %2173 = vpow2.f32 %v936_v60  ;;  %v1066_v12 = vmul.f32 %v1064_v58, %v893_v43  ;;  %v1041_v13 = vmul.f32 1.442695, %v1039_v2  ;;  %v1091_v15 = vmul.f32 %v1090_v3, %v892_v42 }
 0x326   : > { %2175 = vpow2.f32 %v963_v61  ;;  %v1043_v16 = vmul.f32 1.442695, %v1040_v5  ;;  %v1092_v17 = vmul.f32 %v1090_v3, %v893_v43  ;;  %v1067_v19 = vmul.f32 1.442695, %v1065_v7 }
 0x327   : > { %2177 = vpow2.f32 %v965_v63  ;;  %v1117_v20 = vmul.f32 %v1116_v10, %v892_v42  ;;  %v1069_v23 = vmul.f32 1.442695, %v1066_v12  ;;  %v1118_v24 = vmul.f32 %v1116_v10, %v893_v43 }
 0x328   : > { %2179 = vpow2.f32 %v989_v1  ;;  %v1093_v27 = vmul.f32 1.442695, %v1091_v15  ;;  %v1095_v30 = vmul.f32 1.442695, %v1092_v17  ;;  %v2312_v62 = vmov 5  }
 0x329   : > { %2181 = vpow2.f32 %v991_v4  ;;  %v1119_v33 = vmul.f32 1.442695, %v1117_v20  ;;  %v1121_v36 = vmul.f32 1.442695, %v1118_v24  ;;  %v2313_v0 = vmov 4  }
 0x32a   : > { %v2172_v18 = vpop.eup %2171  ;;  %2183 = vpow2.f32 %v1015_v6  ;;  %v2314_v1 = vmov 2   ;;  %v2316_v2 = vmov 3   ;;  %v2317_v3 = vmov 6  }
 0x32b   : > { %v2174_v21 = vpop.eup %2173  ;;  %v938_v22 = vpack.c.bf16 %v2172_v18, %v2172_v18  ;;  %2185 = vpow2.f32 %v1017_v11  ;;  %v1314_v5 = vshrl.u32 %v2578_v14, 16  ;;  %v1450_v7 = vrot.slane %v2578_v14, 3 }
 0x32c   : > { %v2176_v25 = vpop.eup %2175  ;;  %v939_v26 = vpack.c.bf16 %v2174_v21, %v2174_v21  ;;  %2187 = vpow2.f32 %v1041_v13  ;;  %v2318_v10 = vmov 7  }
 0x32d   : > { %v2178_v28 = vpop.eup %2177  ;;  %941 = vst.msk [vmem:[#allocation3] sm:$0xf] %vm940_vm3, %v938_v22  ;;  %v967_v29 = vpack.c.bf16 %v2176_v25, %v2176_v25  ;;  %2189 = vpow2.f32 %v1043_v16  ;;  %v1369_v6 = vrot.slane %v1314_v5, 1  ;;  %v1477_v11 = vrot.slane %v1314_v5, 3 }
 0x32e   : > { %v2180_v31 = vpop.eup %2179  ;;  %942 = vst.msk [vmem:[#allocation3 + $0x4] sm:$0xf] %vm940_vm3, %v939_v26  ;;  %v968_v32 = vpack.c.bf16 %v2178_v28, %v2178_v28  ;;  %2191 = vpow2.f32 %v1067_v19 }
 0x32f   : > { %v2182_v34 = vpop.eup %2181  ;;  %969 = vst.msk [vmem:[#allocation3 + $0x8] sm:$0xf] %vm940_vm3, %v967_v29  ;;  %v993_v35 = vpack.c.bf16 %v2180_v31, %v2180_v31  ;;  %2193 = vpow2.f32 %v1069_v23  ;;  %v1342_v23 = vrot.slane %v2578_v14, 1 }
 0x330   : > { %v2184_v37 = vpop.eup %2183  ;;  %970 = vst.msk [vmem:[#allocation3 + $0xc] sm:$0xf] %vm940_vm3, %v968_v32  ;;  %v994_v39 = vpack.c.bf16 %v2182_v34, %v2182_v34  ;;  %2195 = vpow2.f32 %v1093_v27  ;;  %v1423_v32 = vrot.slane %v1314_v5, 2 }
 0x331   : > { %v2186_v40 = vpop.eup %2185  ;;  %995 = vst.msk [vmem:[#allocation3 + $0x10] sm:$0xf] %vm940_vm3, %v993_v35  ;;  %v1019_v41 = vpack.c.bf16 %v2184_v37, %v2184_v37  ;;  %2197 = vpow2.f32 %v1095_v30 }
 0x332   : > { %v2188_v42 = vpop.eup %2187  ;;  %996 = vst.msk [vmem:[#allocation3 + $0x14] sm:$0xf] %vm940_vm3, %v994_v39  ;;  %v1020_v43 = vpack.c.bf16 %v2186_v40, %v2186_v40  ;;  %2199 = vpow2.f32 %v1119_v33 }
 0x333   : > { %v2190_v47 = vpop.eup %2189  ;;  %1021 = vst.msk [vmem:[#allocation3 + $0x18] sm:$0xf] %vm940_vm3, %v1019_v41  ;;  %v1045_v48 = vpack.c.bf16 %v2188_v42, %v2188_v42  ;;  %2201 = vpow2.f32 %v1121_v36 }
 0x334   : > { %v2192_v49 = vpop.eup %2191  ;;  %1022 = vst.msk [vmem:[#allocation3 + $0x1c] sm:$0xf] %vm940_vm3, %v1020_v43  ;;  %v1046_v50 = vpack.c.bf16 %v2190_v47, %v2190_v47 }
 0x335   : > { %v2194_v51 = vpop.eup %2193  ;;  %1047 = vst.msk [vmem:[#allocation3 + $0x20] sm:$0xf] %vm940_vm3, %v1045_v48  ;;  %v1071_v52 = vpack.c.bf16 %v2192_v49, %v2192_v49 }
 0x336   : > { %v2196_v53 = vpop.eup %2195  ;;  %1048 = vst.msk [vmem:[#allocation3 + $0x24] sm:$0xf] %vm940_vm3, %v1046_v50  ;;  %v1072_v54 = vpack.c.bf16 %v2194_v51, %v2194_v51  ;;  %v1396_v50 = vrot.slane %v2578_v14, 2 }
 0x337   : > { %v2198_v55 = vpop.eup %2197  ;;  %1073 = vst.msk [vmem:[#allocation3 + $0x28] sm:$0xf] %vm940_vm3, %v1071_v52  ;;  %v1097_v56 = vpack.c.bf16 %v2196_v53, %v2196_v53 }
 0x338   : > { %v2200_v57 = vpop.eup %2199  ;;  %1074 = vst.msk [vmem:[#allocation3 + $0x2c] sm:$0xf] %vm940_vm3, %v1072_v54  ;;  %v1098_v58 = vpack.c.bf16 %v2198_v55, %v2198_v55 }
 0x339   : > { %v2202_v59 = vpop.eup %2201  ;;  %1099 = vst.msk [vmem:[#allocation3 + $0x30] sm:$0xf] %vm940_vm3, %v1097_v56  ;;  %v1123_v60 = vpack.c.bf16 %v2200_v57, %v2200_v57 }
 0x33a   : > { %1100 = vst.msk [vmem:[#allocation3 + $0x34] sm:$0xf] %vm940_vm3, %v1098_v58  ;;  %v1124_v61 = vpack.c.bf16 %v2202_v59, %v2202_v59 }
 0x33b   : > { %1125 = vst.msk [vmem:[#allocation3 + $0x38] sm:$0xf] %vm940_vm3, %v1123_v60 }
 0x33c   : > { %1126 = vst.msk [vmem:[#allocation3 + $0x3c] sm:$0xf] %vm940_vm3, %v1124_v61 }
 0x340   : > { %2139 = vset.pattern.permute.xlu1 %v2312_v62 }
 0x391   : > { %v915_v63 = vpop.trf.xlu1 }
 0x392   : > { %1077 = vperm.xlu1 %2139, %v915_v63   ;;  %973 = vperm.xlu0 %2135, %v915_v63  }
 0x393   : > { %946 = vperm.xlu2 %2134, %v915_v63  }
 0x399   : > { %v916_v4 = vpop.trf.xlu1 }
 0x39a   : > { %2138 = vset.pattern.permute.xlu0 %v2313_v0 }
 0x39b   : > { %2136 = vset.pattern.permute.xlu2 %v2314_v1  ;;  %1051 = vperm.xlu0 %2138, %v915_v63  }
 0x39c   : > { %999 = vperm.xlu2 %2136, %v915_v63  }
 0x3a3   : > { %1287 = vrot.lane.b32.xlu0 %v2578_v14, %s2315_s20 }
 0x3a4   : > { %2137 = vset.pattern.permute.xlu2 %v2316_v2  ;;  %2148 = vset.pattern.permute.xlu0 %v2317_v3 }
 0x3a5   : > { %1025 = vperm.xlu2 %2137, %v915_v63  }
 0x3ab   : > { %1107 = vperm.xlu0 %2148, %v916_v4  }
 0x3ad   : > { %2140 = vset.pattern.permute.xlu2 %v2317_v3 }
 0x3ae   : > { %1103 = vperm.xlu2 %2140, %v915_v63  }
 0x3b3   : > { %1316 = vrot.lane.b32.xlu0 %v1314_v5, %s2315_s20 }
 0x3b4   : > { %2149 = vset.pattern.permute.xlu0 %v2318_v10 }
 0x3b6   : > { %2141 = vset.pattern.permute.xlu2 %v2311_v46  ;;  %v1941_v46 = vmul.f32 -1.442695, %v2557_v38 }
 0x3b7   : > { %951 = vperm.xlu2 %2141, %v916_v4  }
 0x3b8   : > { %2203 = vpow2.f32 %v1941_v46 }
 0x3bb   : > { %1370 = vrot.lane.b32.xlu0 %v1369_v6, %s2315_s20 }
 0x3be   : > { %v2204_v13 = vpop.eup %2203 }
 0x3bf   : > { %2142 = vset.pattern.permute.xlu2 %v2310_v45  ;;  %v2629_v45 = vmul.f32 %v2588_v44, %v2571_v8  ;;  %v1542_v17 = vadd.f32 1.0, %v2204_v13 }
 0x3c0   : > { %977 = vperm.xlu2 %2142, %v916_v4  }
 0x3c1   : > { %v943_v12 = vperm.slane %v2629_v45, 0  ;;  %2205 = vrcp.f32 %v1542_v17  ;;  %v997_v19 = vperm.slane %v2629_v45, 2  ;;  %v1023_v25 = vperm.slane %v2629_v45, 3 }
 0x3c2   : > { %v971_v30 = vperm.slane %v2629_v45, 1  ;;  %v1075_v31 = vperm.slane %v2629_v45, 5  ;;  %v1101_v41 = vperm.slane %v2629_v45, 6  ;;  %v1554_v48 = vand.u32 2147483648, %v1542_v17 }
 0x3c3   : > { %1451 = vrot.lane.b32.xlu0 %v1450_v7, %s2315_s20  ;;  %vm1548_vm5 = vweird.f32 %v1542_v17  ;;  %v1552_v51 = vand.u32 2147483647, %v1542_v17  ;;  %v1049_v52 = vperm.slane %v2629_v45, 4 }
 0x3c4   : > { %v1555_v56 = vor.u32 1.1754944e-38, %v1554_v48 }
 0x3c5   : > { %vm1553_vm10 = vcmp.eq.f32.partialorder %v1552_v51, 8.507059e+37 }
 0x3c7   : > { %v2206_v22 = vpop.eup %2205 }
 0x3c8   : > { %2143 = vset.pattern.permute.xlu2 %v2314_v1  ;;  %v1544_v24 = vmul.f32 %v2206_v22, %v1542_v17  ;;  %vm1549_vm4 = vweird.f32 %v2206_v22 }
 0x3c9   : > { %1003 = vperm.xlu2 %2143, %v916_v4   ;;  %vm1550_vm9 = vmor %vm1548_vm5, %vm1549_vm4 }
 0x3ca   : > { %v1545_v28 = vsub.f32 1.0, %v1544_v24 }
 0x3cb   : > { %1478 = vrot.lane.b32.xlu0 %v1477_v11, %s2315_s20 }
 0x3cc   : > { %v1546_v37 = vmul.f32 %v2206_v22, %v1545_v28 }
 0x3ce   : > { %v1547_v47 = vadd.f32 %v2206_v22, %v1546_v37 }
 0x3d0   : > { %v1551_v54 = vsel %vm1550_vm9, %v2206_v22, %v1547_v47 }
 0x3d1   : > { %2144 = vset.pattern.permute.xlu2 %v2316_v2  ;;  %v1556_v58 = vsel %vm1553_vm10, %v1555_v56, %v1551_v54  ;;  %v2011_v54 = vld [vmem:[#allocation3 + $0x18] sm:$0xff]  }
 0x3d2   : > { %1029 = vperm.xlu2 %2144, %v916_v4   ;;  %v1558_v60 = vmul.f32 %v1556_v58, %v2557_v38  ;;  %v2012_v58 = vunpack.c.l.bf16 %v2011_v54 }
 0x3da   : > { %2145 = vset.pattern.permute.xlu2 %v2313_v0 }
 0x3db   : > { %1055 = vperm.xlu2 %2145, %v916_v4  }
 0x3e3   : > { %2146 = vset.pattern.permute.xlu2 %v2312_v62 }
 0x3e4   : > { %1081 = vperm.xlu2 %2146, %v916_v4  }
 0x3ec   : > { %2147 = vset.pattern.permute.xlu2 %v2318_v10 }
 0x3ed   : > { %v947_v15 = vpop.permute.xlu2 %946  ;;  %1129 = vperm.xlu2 %2147, %v915_v63   ;;  %v1987_v63 = vld [vmem:[#allocation3] sm:$0xff]  }
 0x3ee   : > { %v954_v16 = vmul.f32 %v947_v15, %v943_v12  ;;  %v1988_v0 = vunpack.c.l.bf16 %v1987_v63  ;;  %v1989_v1 = vunpack.c.h.bf16 %v1987_v63 }
 0x3f0   : > { %v956_v18 = vpack.c.bf16 %v954_v16, %v954_v16  ;;  %v1147_v10 = vmul.f32 0.0, %v1989_v1 }
 0x3f2   : > { %958 = vst.msk [vmem:[#allocation4] sm:$0xf] %vm940_vm3, %v956_v18  ;;  %v1995_v18 = vld [vmem:[#allocation3 + $0x8] sm:$0xff]  }
 0x3f3   : > { %v1997_v22 = vunpack.c.h.bf16 %v1995_v18 }
 0x3f5   : > { %1133 = vperm.xlu2 %2147, %v916_v4   ;;  %v1146_v4 = vmul.f32 0.0, %v1988_v0 }
 0x3f6   : > { %v1000_v20 = vpop.permute.xlu2 %999 }
 0x3f7   : > { %v1006_v44 = vmul.f32 %v1000_v20, %v997_v19 }
 0x3f9   : > { %v1008_v21 = vpack.c.bf16 %v1006_v44, %v1006_v44 }
 0x3fb   : > { %1010 = vst.msk [vmem:[#allocation4 + $0x10] sm:$0xf] %vm940_vm3, %v1008_v21  ;;  %v1996_v21 = vunpack.c.l.bf16 %v1995_v18 }
 0x3fd   : > { %1343 = vrot.lane.b32.xlu2 %v1342_v23, %s2315_s20 }
 0x3ff   : > { %v1026_v26 = vpop.permute.xlu2 %1025 }
 0x400   : > { %v1032_v27 = vmul.f32 %v1026_v26, %v1023_v25 }
 0x402   : > { %v1034_v29 = vpack.c.bf16 %v1032_v27, %v1032_v27 }
 0x404   : > { %1036 = vst.msk [vmem:[#allocation4 + $0x18] sm:$0xf] %vm940_vm3, %v1034_v29  ;;  %v974_v33 = vpop.permute.xlu0 %973  ;;  %v1078_v34 = vpop.permute.xlu1 %1077 }
 0x405   : > { %v980_v35 = vmul.f32 %v974_v33, %v971_v30  ;;  %v1084_v36 = vmul.f32 %v1078_v34, %v1075_v31  ;;  %1424 = vrot.lane.b32.xlu2 %v1423_v32, %s2315_s20 }
 0x407   : > { %v982_v39 = vpack.c.bf16 %v980_v35, %v980_v35  ;;  %v1086_v40 = vpack.c.bf16 %v1084_v36, %v1084_v36  ;;  %v2003_v35 = vld [vmem:[#allocation3 + $0x10] sm:$0xff]  }
 0x408   : > { %v1104_v42 = vpop.permute.xlu2 %1103 }
 0x409   : > { %984 = vst.msk [vmem:[#allocation4 + $0x8] sm:$0xf] %vm940_vm3, %v982_v39  ;;  %v1110_v43 = vmul.f32 %v1104_v42, %v1101_v41  ;;  %v2004_v39 = vunpack.c.l.bf16 %v2003_v35 }
 0x40a   : > { %1088 = vst.msk [vmem:[#allocation4 + $0x28] sm:$0xf] %vm940_vm3, %v1086_v40  ;;  %v2005_v40 = vunpack.c.h.bf16 %v2003_v35 }
 0x40b   : > { %v1112_v49 = vpack.c.bf16 %v1110_v43, %v1110_v43 }
 0x40d   : > { %1114 = vst.msk [vmem:[#allocation4 + $0x30] sm:$0xf] %vm940_vm3, %v1112_v49  ;;  %1397 = vrot.lane.b32.xlu2 %v1396_v50, %s2315_s20  ;;  %v1052_v53 = vpop.permute.xlu0 %1051 }
 0x40e   : > { %v1058_v55 = vmul.f32 %v1052_v53, %v1049_v52 }
 0x410   : > { %v1060_v57 = vpack.c.bf16 %v1058_v55, %v1058_v55 }
 0x411   : > { %v952_v59 = vpop.permute.xlu2 %951 }
 0x412   : > { %1062 = vst.msk [vmem:[#allocation4 + $0x20] sm:$0xf] %vm940_vm3, %v1060_v57  ;;  %v955_v14 = vmul.f32 %v952_v59, %v943_v12  ;;  %v2013_v59 = vunpack.c.h.bf16 %v2011_v54 }
 0x414   : > { %v957_v61 = vpack.c.bf16 %v955_v14, %v955_v14 }
 0x415   : > { %1560 = vrot.lane.b32.xlu2 %v1558_v60, %s2319_s12  ;;  %v1288_v62 = vpop.permute.xlu0 %1287 }
 0x416   : > { %959 = vst.msk [vmem:[#allocation4 + $0x4] sm:$0xf] %vm940_vm3, %v957_v61 }
 0x41a   : > { %v978_v2 = vpop.permute.xlu2 %977 }
 0x41b   : > { %v981_v3 = vmul.f32 %v978_v2, %v971_v30 }
 0x41d   : > { %v1991_v5 = vld [vmem:[#allocation4] sm:$0xff]   ;;  %v983_v6 = vpack.c.bf16 %v981_v3, %v981_v3  ;;  %v1108_v7 = vpop.permute.xlu0 %1107 }
 0x41e   : > { %v1992_v11 = vunpack.c.l.bf16 %v1991_v5  ;;  %v1993_v46 = vunpack.c.h.bf16 %v1991_v5  ;;  %v1111_v12 = vmul.f32 %v1108_v7, %v1101_v41  ;;  %v2019_v5 = vld [vmem:[#allocation3 + $0x20] sm:$0xff]  }
 0x41f   : > { %985 = vst.msk [vmem:[#allocation4 + $0xc] sm:$0xf] %vm940_vm3, %v983_v6 }
 0x420   : > { %v1152_v38 = vadd.f32 %v1992_v11, %v1146_v4  ;;  %v1153_v13 = vadd.f32 %v1993_v46, %v1147_v10  ;;  %v1113_v15 = vpack.c.bf16 %v1111_v12, %v1111_v12  ;;  %v2020_v11 = vunpack.c.l.bf16 %v2019_v5 }
 0x421   : > { %v2021_v46 = vunpack.c.h.bf16 %v2019_v5 }
 0x422   : > { %v1154_v16 = vpack.c.bf16 %v1152_v38, %v1152_v38  ;;  %v1155_v17 = vpack.c.bf16 %v1153_v13, %v1153_v13  ;;  %1115 = vst.msk [vmem:[#allocation4 + $0x34] sm:$0xf] %vm940_vm3, %v1113_v15  ;;  %v1163_v26 = vmul.f32 %v1996_v21, %v1152_v38  ;;  %v1164_v27 = vmul.f32 %v1997_v22, %v1153_v13  ;;  %v2027_v22 = vld [vmem:[#allocation3 + $0x28] sm:$0xff]  }
 0x423   : > { %v1004_v20 = vpop.permute.xlu2 %1003 }
 0x424   : > { %1156 = vst.msk [vmem:[#allocation4] sm:$0xf] %vm940_vm3, %v1154_v16  ;;  %v1007_v44 = vmul.f32 %v1004_v20, %v997_v19 }
 0x425   : > { %1157 = vst.msk [vmem:[#allocation4 + $0x4] sm:$0xf] %vm940_vm3, %v1155_v17  ;;  %v1317_v61 = vpop.permute.xlu0 %1316 }
 0x426   : > { %v1999_v23 = vld [vmem:[#allocation4 + $0x8] sm:$0xff]   ;;  %v1009_v24 = vpack.c.bf16 %v1007_v44, %v1007_v44 }
 0x427   : > { %v2000_v28 = vunpack.c.l.bf16 %v1999_v23  ;;  %v2001_v29 = vunpack.c.h.bf16 %v1999_v23 }
 0x428   : > { %1011 = vst.msk [vmem:[#allocation4 + $0x14] sm:$0xf] %vm940_vm3, %v1009_v24 }
 0x429   : > { %v1170_v30 = vadd.f32 %v2000_v28, %v1163_v26  ;;  %v1171_v32 = vadd.f32 %v2001_v29, %v1164_v27  ;;  %v2028_v27 = vunpack.c.l.bf16 %v2027_v22  ;;  %v2029_v28 = vunpack.c.h.bf16 %v2027_v22  ;;  %v1983_v22 = vld [vmem:[%s2529_s7 + $0x8] sm:$0xff] }
 0x42b   : > { %v1172_v33 = vpack.c.bf16 %v1170_v30, %v1170_v30  ;;  %v1173_v34 = vpack.c.bf16 %v1171_v32, %v1171_v32  ;;  %v1181_v43 = vmul.f32 %v2004_v39, %v1170_v30  ;;  %v1182_v47 = vmul.f32 %v2005_v40, %v1171_v32  ;;  %v2035_v30 = vld [vmem:[#allocation3 + $0x30] sm:$0xff]  }
 0x42c   : > { %v1030_v36 = vpop.permute.xlu2 %1029  ;;  %v1974_v37 = vld [vmem:[#allocation4] sm:$0xff]  ;;  %v2036_v40 = vunpack.c.l.bf16 %v2035_v30 }
 0x42d   : > { %1174 = vst.msk [vmem:[#allocation4 + $0x8] sm:$0xf] %vm940_vm3, %v1172_v33  ;;  %v1033_v19 = vmul.f32 %v1030_v36, %v1023_v25  ;;  %1306 = vmatpush.bf16.msra.mxu3 %v1974_v37  ;;  %v1371_v33 = vpop.permute.xlu0 %1370 }
 0x42e   : > { %1175 = vst.msk [vmem:[#allocation4 + $0xc] sm:$0xf] %vm940_vm3, %v1173_v34 }
 0x42f   : > { %v2007_v41 = vld [vmem:[#allocation4 + $0x10] sm:$0xff]   ;;  %v1035_v42 = vpack.c.bf16 %v1033_v19, %v1033_v19 }
 0x430   : > { %v2008_v48 = vunpack.c.l.bf16 %v2007_v41  ;;  %v2009_v49 = vunpack.c.h.bf16 %v2007_v41  ;;  %1905 = vmatmul.msk.bf16.vlgmr.msra.gmra.mxu3 %vm1295_vm11, %v1288_v62  ;;  %v2039_v19 = vld [vmem:[#allocation4 + $0x30] sm:$0xff]   ;;  %v2037_v41 = vunpack.c.h.bf16 %v2035_v30 }
 0x431   : > { %1037 = vst.msk [vmem:[#allocation4 + $0x1c] sm:$0xf] %vm940_vm3, %v1035_v42  ;;  %v2040_v42 = vunpack.c.l.bf16 %v2039_v19 }
 0x432   : > { %v1188_v50 = vadd.f32 %v2008_v48, %v1181_v43  ;;  %v1189_v51 = vadd.f32 %v2009_v49, %v1182_v47  ;;  %v2041_v43 = vunpack.c.h.bf16 %v2039_v19 }
 0x434   : > { %v1190_v53 = vpack.c.bf16 %v1188_v50, %v1188_v50  ;;  %v1191_v25 = vpack.c.bf16 %v1189_v51, %v1189_v51  ;;  %v1199_v62 = vmul.f32 %v2012_v58, %v1188_v50  ;;  %v1200_v63 = vmul.f32 %v2013_v59, %v1189_v51  ;;  %v2043_v59 = vld [vmem:[#allocation3 + $0x38] sm:$0xff]  }
 0x435   : > { %v1056_v55 = vpop.permute.xlu2 %1055  ;;  %v1975_v56 = vld [vmem:[#allocation4 + $0x8] sm:$0xff] }
 0x436   : > { %1192 = vst.msk [vmem:[#allocation4 + $0x10] sm:$0xf] %vm940_vm3, %v1190_v53  ;;  %v1059_v57 = vmul.f32 %v1056_v55, %v1049_v52  ;;  %1334 = vmatpush.bf16.msrb.mxu2 %v1975_v56 }
 0x437   : > { %1193 = vst.msk [vmem:[#allocation4 + $0x14] sm:$0xf] %vm940_vm3, %v1191_v25 }
 0x438   : > { %v2015_v14 = vld [vmem:[#allocation4 + $0x18] sm:$0xff]   ;;  %v1061_v60 = vpack.c.bf16 %v1059_v57, %v1059_v57 }
 0x439   : > { %v2016_v0 = vunpack.c.l.bf16 %v2015_v14  ;;  %v2017_v1 = vunpack.c.h.bf16 %v2015_v14  ;;  %1910 = vmatmul.msk.bf16.vlgmr.msrb.gmra.mxu2 %vm1295_vm11, %v1317_v61  ;;  %v2044_v61 = vunpack.c.l.bf16 %v2043_v59 }
 0x43a   : > { %1063 = vst.msk [vmem:[#allocation4 + $0x24] sm:$0xf] %vm940_vm3, %v1061_v60 }
 0x43b   : > { %v1206_v2 = vadd.f32 %v2016_v0, %v1199_v62  ;;  %v1207_v3 = vadd.f32 %v2017_v1, %v1200_v63  ;;  %v2045_v62 = vunpack.c.h.bf16 %v2043_v59 }
 0x43d   : > { %v1208_v4 = vpack.c.bf16 %v1206_v2, %v1206_v2  ;;  %v1209_v52 = vpack.c.bf16 %v1207_v3, %v1207_v3  ;;  %v1217_v13 = vmul.f32 %v2020_v11, %v1206_v2  ;;  %v1218_v15 = vmul.f32 %v2021_v46, %v1207_v3  ;;  %v1452_v11 = vpop.permute.xlu0 %1451 }
 0x43e   : > { %v1082_v6 = vpop.permute.xlu2 %1081  ;;  %v1976_v7 = vld [vmem:[#allocation4 + $0x10] sm:$0xff] }
 0x43f   : > { %1210 = vst.msk [vmem:[#allocation4 + $0x18] sm:$0xf] %vm940_vm3, %v1208_v4  ;;  %v1085_v10 = vmul.f32 %v1082_v6, %v1075_v31  ;;  %1361 = vmatpush.bf16.msrb.mxu3 %v1976_v7  ;;  %v1127_v31 = vperm.slane %v2629_v45, 7 }
 0x440   : > { %1211 = vst.msk [vmem:[#allocation4 + $0x1c] sm:$0xf] %vm940_vm3, %v1209_v52 }
 0x441   : > { %v2023_v12 = vld [vmem:[#allocation4 + $0x20] sm:$0xff]   ;;  %v1087_v38 = vpack.c.bf16 %v1085_v10, %v1085_v10 }
 0x442   : > { %v2024_v16 = vunpack.c.l.bf16 %v2023_v12  ;;  %v2025_v17 = vunpack.c.h.bf16 %v2023_v12 }
 0x443   : > { %1089 = vst.msk [vmem:[#allocation4 + $0x2c] sm:$0xf] %vm940_vm3, %v1087_v38 }
 0x444   : > { %v1224_v18 = vadd.f32 %v2024_v16, %v1217_v13  ;;  %v1225_v20 = vadd.f32 %v2025_v17, %v1218_v15 }
 0x445   : > { %v1479_v38 = vpop.permute.xlu0 %1478 }
 0x446   : > { %v1226_v44 = vpack.c.bf16 %v1224_v18, %v1224_v18  ;;  %v1227_v21 = vpack.c.bf16 %v1225_v20, %v1225_v20  ;;  %v1235_v34 = vmul.f32 %v2028_v27, %v1224_v18  ;;  %v1236_v35 = vmul.f32 %v2029_v28, %v1225_v20  ;;  %v1985_v18 = vld [vmem:[%s2529_s7 + $0x18] sm:$0xff] }
 0x447   : > { %v1130_v23 = vpop.permute.xlu2 %1129  ;;  %v1977_v24 = vld [vmem:[#allocation4 + $0x18] sm:$0xff] }
 0x448   : > { %1228 = vst.msk [vmem:[#allocation4 + $0x20] sm:$0xf] %vm940_vm3, %v1226_v44  ;;  %v1136_v26 = vmul.f32 %v1130_v23, %v1127_v31  ;;  %1388 = vmatpush.bf16.msrb.mxu0 %v1977_v24  ;;  %v1984_v44 = vld [vmem:[%s2529_s7 + $0x10] sm:$0xff] }
 0x449   : > { %1229 = vst.msk [vmem:[#allocation4 + $0x24] sm:$0xf] %vm940_vm3, %v1227_v21 }
 0x44a   : > { %v2031_v29 = vld [vmem:[#allocation4 + $0x28] sm:$0xff]   ;;  %v1138_v32 = vpack.c.bf16 %v1136_v26, %v1136_v26 }
 0x44b   : > { %v2032_v36 = vunpack.c.l.bf16 %v2031_v29  ;;  %v2033_v37 = vunpack.c.h.bf16 %v2031_v29  ;;  %1920 = vmatmul.msk.bf16.vlgmr.msrb.gmra.mxu0 %vm1295_vm11, %v1371_v33 }
 0x44c   : > { %1140 = vst.msk [vmem:[#allocation4 + $0x38] sm:$0xf] %vm940_vm3, %v1138_v32 }
 0x44d   : > { %v1242_v45 = vadd.f32 %v2032_v36, %v1235_v34  ;;  %v1243_v39 = vadd.f32 %v2033_v37, %v1236_v35  ;;  %v2154_v37 = vld [vmem:[%s653_s15] ss:$0 sm:$0xff] }
 0x44f   : > { %v1244_v47 = vpack.c.bf16 %v1242_v45, %v1242_v45  ;;  %v1245_v48 = vpack.c.bf16 %v1243_v39, %v1243_v39  ;;  %v1253_v49 = vmul.f32 %v2036_v40, %v1242_v45  ;;  %v1254_v50 = vmul.f32 %v2037_v41, %v1243_v39  ;;  %v1134_v51 = vpop.permute.xlu2 %1133 }
 0x450   : > { %v1137_v53 = vmul.f32 %v1134_v51, %v1127_v31  ;;  %v1978_v25 = vld [vmem:[#allocation4 + $0x20] sm:$0xff]  ;;  %v1982_v31 = vld [vmem:[%s2529_s7] sm:$0xff] }
 0x451   : > { %1246 = vst.msk [vmem:[#allocation4 + $0x28] sm:$0xf] %vm940_vm3, %v1244_v47  ;;  %v1260_v54 = vadd.f32 %v2040_v42, %v1253_v49  ;;  %v1261_v55 = vadd.f32 %v2041_v43, %v1254_v50  ;;  %1415 = vmatpush.bf16.msrb.mxu1 %v1978_v25  ;;  %v1537_v49 = vmul.f32 %v2154_v37, %v2571_v8 }
 0x452   : > { %1247 = vst.msk [vmem:[#allocation4 + $0x2c] sm:$0xf] %vm940_vm3, %v1245_v48  ;;  %v1139_v56 = vpack.c.bf16 %v1137_v53, %v1137_v53 }
 0x453   : > { %v1262_v57 = vpack.c.bf16 %v1260_v54, %v1260_v54  ;;  %v1263_v58 = vpack.c.bf16 %v1261_v55, %v1261_v55  ;;  %v1271_v0 = vmul.f32 %v2044_v61, %v1260_v54  ;;  %v1272_v1 = vmul.f32 %v2045_v62, %v1261_v55 }
 0x454   : > { %1141 = vst.msk [vmem:[#allocation4 + $0x3c] sm:$0xf] %vm940_vm3, %v1139_v56 }
 0x455   : > { %1264 = vst.msk [vmem:[#allocation4 + $0x30] sm:$0xf] %vm940_vm3, %v1262_v57  ;;  %1604 = vmatpush.bf16.msra.mxu1 %v1985_v18 }
 0x456   : > { %1265 = vst.msk [vmem:[#allocation4 + $0x34] sm:$0xf] %vm940_vm3, %v1263_v58  ;;  %v2207_v58 = vld [vmem:[#allocation2] sm:$0xff] }
 0x457   : > { %v1344_v14 = vpop.permute.xlu2 %1343 }
 0x458   : > { %1915 = vmatmul.msk.bf16.vlgmr.msrb.gmra.mxu3 %vm1295_vm11, %v1344_v14 }
 0x459   : > { %v1979_v60 = vld [vmem:[#allocation4 + $0x28] sm:$0xff]  ;;  %1605 = vmatpush.bf16.msra.mxu1 %v1984_v44 }
 0x45a   : > { %1442 = vmatpush.bf16.msra.mxu2 %v1979_v60 }
 0x45b   : > { %v2047_v63 = vld [vmem:[#allocation4 + $0x38] sm:$0xff]  }
 0x45c   : > { %v2048_v2 = vunpack.c.l.bf16 %v2047_v63  ;;  %v2049_v3 = vunpack.c.h.bf16 %v2047_v63 }
 0x45d   : > { %v1980_v4 = vld [vmem:[#allocation4 + $0x30] sm:$0xff]  ;;  %1606 = vmatpush.bf16.msra.mxu1 %v1983_v22 }
 0x45e   : > { %v1278_v52 = vadd.f32 %v2048_v2, %v1271_v0  ;;  %v1279_v5 = vadd.f32 %v2049_v3, %v1272_v1  ;;  %1469 = vmatpush.bf16.msra.mxu3 %v1980_v4 }
 0x45f   : > { %v1425_v6 = vpop.permute.xlu2 %1424 }
 0x460   : > { %v1280_v7 = vpack.c.bf16 %v1278_v52, %v1278_v52  ;;  %v1281_v10 = vpack.c.bf16 %v1279_v5, %v1279_v5  ;;  %1930 = vmatmul.msk.bf16.vlgmr.msra.gmra.mxu2 %vm1295_vm11, %v1425_v6 }
 0x461   : > { %1607 = vmatpush.bf16.msra.mxu1 %v1982_v31 }
 0x462   : > { %1282 = vst.msk [vmem:[#allocation4 + $0x38] sm:$0xf] %vm940_vm3, %v1280_v7 }
 0x463   : > { %1283 = vst.msk [vmem:[#allocation4 + $0x3c] sm:$0xf] %vm940_vm3, %v1281_v10 }
 0x467   : > { %v1398_v46 = vpop.permute.xlu2 %1397 }
 0x468   : > { %1925 = vmatmul.msk.bf16.vlgmr.msrb.gmra.mxu1 %vm1295_vm11, %v1398_v46  ;;  %1935 = vmatmul.msk.bf16.vlgmr.msra.gmra.mxu3 %vm1295_vm11, %v1452_v11 }
 0x46a   : > { %v1981_v12 = vld [vmem:[#allocation4 + $0x38] sm:$0xff] }
 0x46b   : > { %1496 = vmatpush.bf16.msra.mxu0 %v1981_v12 }
 0x46e   : > { %1940 = vmatmul.msk.bf16.vlgmr.msra.gmra.mxu0 %vm1295_vm11, %v1479_v38 }
 0x46f   : > { %v1561_v53 = vpop.permute.xlu2 %1560 }
 0x4b3   : > { %v1308_v13 = vpop.f32.mrf.mxu3 }
 0x4bb   : > { %v1310_v15 = vpop.f32.mrf.mxu3 }
 0x4bc   : > { %v1336_v16 = vpop.f32.mrf.mxu2 }
 0x4bd   : > { %v1503_v24 = vrot.slane %v1336_v16, 7 }
 0x4bf   : > { %v1523_v29 = vsel %vm747_vm6, %v1308_v13, %v1503_v24  ;;  %vm1531_vm6 = vcmask 1046528  }
 0x4c4   : > { %v1338_v17 = vpop.f32.mrf.mxu2 }
 0x4c8   : > { %v1390_v20 = vpop.f32.mrf.mxu0 }
 0x4c9   : > { %v1509_v34 = vrot.slane %v1390_v20, 5 }
 0x4d0   : > { %v1392_v21 = vpop.f32.mrf.mxu0 }
 0x4db   : > { %v1363_v23 = vpop.f32.mrf.mxu3 }
 0x4dc   : > { %v1506_v26 = vrot.slane %v1363_v23, 6 }
 0x4de   : > { %v1524_v32 = vsel %vm754_vm7, %v1523_v29, %v1506_v26 }
 0x4df   : > { %v1525_v35 = vsel %vm761_vm8, %v1524_v32, %v1509_v34 }
 0x4e3   : > { %v1365_v27 = vpop.f32.mrf.mxu3  ;;  %v1444_v28 = vpop.f32.mrf.mxu2 }
 0x4e4   : > { %v1515_v19 = vrot.slane %v1444_v28, 3 }
 0x4e5   : > { %v1417_v30 = vpop.f32.mrf.mxu1 }
 0x4e6   : > { %v1512_v33 = vrot.slane %v1417_v30, 4 }
 0x4e8   : > { %v1526_v36 = vsel %vm851_vm14, %v1525_v35, %v1512_v33 }
 0x4e9   : > { %v1528_v42 = vsel %vm1527_vm12, %v1526_v36, %v1515_v19 }
 0x4eb   : > { %v1446_v45 = vpop.f32.mrf.mxu2  ;;  %v1471_v39 = vpop.f32.mrf.mxu3 }
 0x4ec   : > { %v1518_v40 = vrot.slane %v1471_v39, 2  ;;  %v1498_v41 = vpop.f32.mrf.mxu0 }
 0x4ed   : > { %v1521_v43 = vrot.slane %v1498_v41, 1  ;;  %v1419_v47 = vpop.f32.mrf.mxu1 }
 0x4ee   : > { %v1530_v48 = vsel %vm1529_vm15, %v1528_v42, %v1518_v40 }
 0x4ef   : > { %v1532_v50 = vsel %vm1531_vm6, %v1530_v48, %v1521_v43 }
 0x4f0   : > { %v1538_v51 = vadd.f32 %v1537_v49, %v1532_v50 }
 0x4f2   : > { %v1563_v25 = vmul.f32 %v1561_v53, %v1538_v51 }
 0x4f3   : > { %v1473_v54 = vpop.f32.mrf.mxu3 }
 0x4f4   : > { %v1572_v55 = vpack.c.bf16 %v1563_v25, %v1563_v25  ;;  %v1500_v56 = vpop.f32.mrf.mxu0 }
 0x4f6   : > { %1958 = vmatmul.msk.bf16.vlgmr.msra.gmra.mxu1 %vm824_vm13, %v1572_v55 }
 0x573   : > { %v1609_v57 = vpop.f32.mrf.mxu1 }
 0x574   : > { %v1613_v59 = vadd.f32 %v2207_v58, %v1609_v57 }
 0x576   : > { %1614 = vst.msk [vmem:[#allocation2] sm:$0xff] %vm670_vm1, %v1613_v59 }
 0x577   : > { %1618 = sbr.rel (%p1959_p1) target bundleno = 1673 (0x689), region = 84 }
 0x57b   : > { %v1611_v14 = vpop.f32.mrf.mxu1 }
 0x57c   : > { %v1621_v8 = vsel %vm670_vm1, %v1613_v59, 0.0  ;;  %v2208_v11 = vld [vmem:[%s2838_s29] ss:$0 sm:$0xff] }
 0x57d   : > { %1622 = vadd.xlane.f32.xlu0 %v1621_v8 }
 0x5f0   : > { %v1623_v60 = vpop.xlane.xlu0 %1622 }
 0x5f1   : > { %v1624_v61 = vmul.f32 %v1623_v60, %v2534_v9 }
 0x5f3   : > { %v1625_v62 = vsub.f32 %v1613_v59, %v1624_v61 }
 0x5f5   : > { %v1626_v63 = vmul.f32 %v1625_v62, %v1625_v62 }
 0x5f7   : > { %v1627_v0 = vsel %vm670_vm1, %v1626_v63, 0.0 }
 0x5f8   : > { %1628 = vadd.xlane.f32.xlu0 %v1627_v0 }
 0x66b   : > { %v1629_v1 = vpop.xlane.xlu0 %1628 }
 0x66c   : > { %v1630_v2 = vmul.f32 %v1629_v1, %v2534_v9  ;;  %v2209_v9 = vld [vmem:[%s2839_s3] ss:$0 sm:$0xff] }
 0x66e   : > { %v1631_v3 = vadd.f32 1e-05, %v1630_v2 }
 0x670   : > { %2210 = vrsqrt.f32 %v1631_v3  ;;  %vm1638_vm8 = vweird.f32 %v1631_v3 }
 0x676   : > { %v2211_v4 = vpop.eup %2210 }
 0x677   : > { %v1633_v52 = vmul.f32 %v2211_v4, %v1631_v3  ;;  %vm1639_vm7 = vweird.f32 %v2211_v4 }
 0x678   : > { %vm1640_vm13 = vmor %vm1638_vm8, %vm1639_vm7 }
 0x679   : > { %v1634_v5 = vmul.f32 %v2211_v4, %v1633_v52 }
 0x67b   : > { %v1635_v6 = vmul.f32 0.5, %v1634_v5 }
 0x67d   : > { %v1636_v7 = vsub.f32 1.5, %v1635_v6 }
 0x67f   : > { %v1637_v10 = vmul.f32 %v2211_v4, %v1636_v7 }
 0x681   : > { %v1641_v46 = vsel %vm1640_vm13, %v2211_v4, %v1637_v10 }
 0x682   : > { %v1642_v12 = vmul.f32 %v1641_v46, %v1625_v62 }
 0x684   : > { %v1646_v38 = vmul.f32 %v2208_v11, %v1642_v12 }
 0x686   : > { %v1650_v13 = vadd.f32 %v2209_v9, %v1646_v38 }
 0x688   : > { %1651 = vst.msk [vmem:[%s611_s14] sm:$0xff] %vm670_vm1, %v1650_v13 }
 0x689 PF: > { %s2840_s4 = sld [smem:[#allocation12_spill]]  ;;  %s1665_s16 = sshll.u32 %s611_s14, 4  ;;  %s1666_s16 = int_to_ptr.vmem [resolvable:$true] %s1665_s16 }
 0x68a   : > { %s2841_s13 = sld [smem:[#allocation9_spill]] }
 0x68b   : > { %s2843_s22 = sld [smem:[#allocation27_spill]] }
 0x68f   : > { %s1961_s25 = sshll.u32 %s2840_s4, 3 }
 0x690   : > { %s2844_s20 = sand.u32 1, %s2841_s13  }
 0x691   : > { %s1663_s17 = scalar_lea.hbm %s2843_s22, %s1961_s25  ;;  %s1653_s12 = scalar_lea.sflag [#allocation6], %s2844_s20 }
 0x692   : > { %s1667_s28 = sshll.u32 %s1663_s17, 4  ;;  %s2232_s18 = scalar_lea.hbm %s2843_s22, 16  ;;  %s1668_s28 = int_to_ptr.hbm [resolvable:$true] %s1667_s28 }
 0x693   : > { %s2226_s27 = sshra.s32 %s1668_s28, 4  ;;  %s2227_s27 = int_to_ptr.hbm [resolvable:$true] %s2226_s27 }
 0x694   : > { %s2228_s7 = scalar_lea.hbm %s2227_s27, 8  ;;  %p2233_p6 = scmp.lt.s32.totalorder %s2227_s27, %s2843_s22 }
 0x695   : > { %p2229_p2 = scmp.ne.s32.totalorder %s2227_s27, %s2228_s7  ;;  %p2234_p7 = scmp.lt.s32.totalorder %s2232_s18, %s2228_s7 }
 0x697   : > { %p2230_p4 = pnand %p2229_p2, %p2444_p3  ;;  %p2235_p8 = por %p2234_p7, %p2233_p6 }
 0x699   : > { %p2231_p5 = pneg %p2230_p4 }
 0x69b   : > { %p2236_p10 = pnand %p2235_p8, %p2231_p5 }
 0x69d   : > { %2239 = shalt.err (!%p2236_p10)
}
 0x69e   : > { %2050 = dma.vmem_to_hbm [thread:$0]  (%p2444_p3), %s1666_s16, 128, %s1668_s28, %s1653_s12  }
 0x69f PF: > { %s2845_s23 = sld [smem:[#allocation15_spill]] }
 0x6a0   : > { %s2846_s14 = sld [smem:[#allocation8_spill]] }
 0x6a5   : > { %p2056_p11 = scmp.ge.s32.totalorder %s2845_s23, 2 }
 0x6a6   : > { %s1679_s3 = sand.u32 1, %s2846_s14  }
 0x6a7   : > { %p2053_p12 = pnand %p2056_p11, %p2454_p9  ;;  %s1680_s4 = scalar_lea.sflag [#allocation6], %s1679_s3 }
 0x6a9   : > { %p2054_p13 = pneg %p2053_p12 }
 0x6ab   : > { %2273 = dma.done.wait (%p2054_p13), %s1680_s4, 128  }
 0x6ac   : > { %2275 = vsyncadd (%p2054_p13), %s1680_s4, 4294967168  ;;  %s27_s20 = sadd.s32 1, %s2845_s23   ;;  %s2848_s29 = sld [smem:[#allocation9_spill]] }
 0x6ad   : > { %p24_p0 = scmp.ge.s32.totalorder %s27_s20, 6   ;;  %s2849_s30 = sld [smem:[#allocation10_spill]] }
 0x6ae   : > { %s2850_s15 = sld [smem:[#allocation20_spill]] }
 0x6af   : > { %s2851_s16 = sld [smem:[#allocation13_spill]]  ;;  %26 = sbr.rel (!%p24_p0) target bundleno = 13 (0xd), region = 166 }
 0x6b0   : > { %s2852_s17 = sld [smem:[#allocation14_spill]] }
 0x6b1   : > { %s2853_s18 = sld [smem:[#allocation16_spill]] }
 0x6b2   : > { %s2854_s19 = sld [smem:[#allocation18_spill]] }
 0x6b4   :  { %1686 = vsyncpa [#allocation6], 1 }
 0x6b5   :  { %1688 = vsyncpa [#allocation6 + $0x1], 1 }

</bundles_post_ra>
